<compile_context>
chip_gen: v6e
topology: v6e:2x2x1
jax: 0.10.0
libtpu: 0.0.40
codegen_flags: <defaults>
</compile_context>

<pallas_src>
import functools
import math

import jax
import jax.numpy as jnp
from jax.experimental import pallas as pl
from jax.experimental.pallas import tpu as pltpu


def self_attention_kernel(x_ref, w_in_ref, wo_ref, vec_ref, out_ref,
                          *, num_heads, eps, compute_dtype, approx_recip):
    """One grid step = one batch element, all heads at once.

    x_ref   : (1, S, E)  f32   input block
    w_in_ref: (E, 3*E)   cd    columns = [Wq^T * scale | Wk^T | Wv^T]
    wo_ref  : (E, E)     cd    out_proj_weight^T
    vec_ref : (6, E)     f32   rows = [bq*scale, bk, bv, bo, gamma, beta]
    out_ref : (1, S, E)  f32
    """
    _, S, E = x_ref.shape
    H = num_heads
    Dh = E // H

    x = x_ref[0]                                   # (S, E) f32
    vec = vec_ref[...]                             # (6, E) f32
    bq, bk, bv = vec[0:1], vec[1:2], vec[2:3]      # (1, E) each
    bo, gamma, beta = vec[3:4], vec[4:5], vec[5:6]

    # ---- Fused QKV projection: one full-width MXU matmul (M=S, N=3E, K=E). ----
    qkv = jnp.dot(x.astype(compute_dtype), w_in_ref[...],
                  preferred_element_type=jnp.float32)            # (S, 3E) f32
    q = (qkv[:, 0 * E:1 * E] + bq).astype(compute_dtype)         # already scaled
    k = (qkv[:, 1 * E:2 * E] + bk).astype(compute_dtype)
    v = (qkv[:, 2 * E:3 * E] + bv).astype(compute_dtype)

    # ---- Split heads onto a leading batch axis: (H, S, Dh). ----
    def split_heads(t):
        return jnp.stack([t[:, h * Dh:(h + 1) * Dh] for h in range(H)], axis=0)

    qh, kh, vh = split_heads(q), split_heads(k), split_heads(v)

    # ---- Scores + numerically stable softmax (f32 stats) + AV. ----
    s = jnp.einsum("hqd,hkd->hqk", qh, kh,
                   preferred_element_type=jnp.float32)           # (H, S, S) f32
    s = s - jnp.max(s, axis=-1, keepdims=True)
    p = jnp.exp(s)
    p = p * pl.reciprocal(jnp.sum(p, axis=-1, keepdims=True), approx=approx_recip)
    o = jnp.einsum("hqk,hkd->hqd", p.astype(compute_dtype), vh,
                   preferred_element_type=jnp.float32)           # (H, S, Dh) f32

    # ---- Merge heads (PyTorch column order) and ONE (S,E)@(E,E) out-proj. ----
    o_cd = o.astype(compute_dtype)
    o2d = jnp.concatenate([o_cd[h] for h in range(H)], axis=-1)  # (S, E)
    y = jnp.dot(o2d, wo_ref[...], preferred_element_type=jnp.float32)  # (S, E) f32

    # Residual + out-proj bias (dropout == identity in eval mode).
    z = x + y + bo

    # ---- LayerNorm over the embedding dim (biased variance, f32). ----
    mean = jnp.mean(z, axis=-1, keepdims=True)
    var = jnp.mean(jnp.square(z - mean), axis=-1, keepdims=True)
    out_ref[0] = ((z - mean) * jax.lax.rsqrt(var + eps) * gamma + beta
                  ).astype(out_ref.dtype)


def _vmem_limit_bytes():
    """~75% of physical VMEM (96 MiB on v5e/v6e, 48 MiB on v7x)."""
    try:
        cap = int(pltpu.get_tpu_info().vmem_capacity_bytes)
    except Exception:  # pragma: no cover - conservative fallback
        cap = 64 * 1024 * 1024
    return min((cap * 3) // 4, 96 * 1024 * 1024)


def self_attention_layer(x, params, *, num_heads, eps=1e-5,
                         compute_dtype=jnp.bfloat16, approx_recip=None):
    """x: (B, S, E) float32.  params: dict of PyTorch-convention weights."""
    B, S, E = x.shape
    H = num_heads
    assert E % H == 0, "hidden_dim must be divisible by num_heads"
    Dh = E // H
    scale = 1.0 / math.sqrt(Dh)

    # PyTorch nn.MultiheadAttention packs QKV as in_proj_weight (3E, E):
    # q = x @ Wq^T + bq, etc.  Build a single (E, 3E) head-ordered weight with
    # the attention scale folded into the Q columns/bias (host-side, free).
    w_in = params["in_proj_weight"]                   # (3E, E) rows=[Wq;Wk;Wv]
    b_in = params["in_proj_bias"]                     # (3E,)
    wq, wk, wv = w_in[:E], w_in[E:2 * E], w_in[2 * E:]
    w_in_2d = jnp.concatenate([wq.T * scale, wk.T, wv.T],
                              axis=1).astype(compute_dtype)      # (E, 3E)
    wo_2d = params["out_proj_weight"].T.astype(compute_dtype)    # (E, E)

    # Pack all small vectors into one input: [bq*scale, bk, bv, bo, gamma, beta].
    vec = jnp.stack([b_in[:E] * scale, b_in[E:2 * E], b_in[2 * E:],
                     params["out_proj_bias"], params["ln_weight"],
                     params["ln_bias"]], axis=0).astype(jnp.float32)  # (6, E)

    x_spec = pl.BlockSpec((1, S, E), lambda b: (b, 0, 0))

    def resident(arr):  # constant index_map -> DMA'd once, stays in VMEM
        nd = arr.ndim
        return pl.BlockSpec(arr.shape, lambda b: (0,) * nd)

    if approx_recip is None:
        approx_recip = (compute_dtype != jnp.float32)

    kernel = functools.partial(
        self_attention_kernel, num_heads=H, eps=eps,
        compute_dtype=compute_dtype, approx_recip=approx_recip)

    return pl.pallas_call(
        kernel,
        out_shape=jax.ShapeDtypeStruct((B, S, E), x.dtype),
        grid=(B,),
        in_specs=[x_spec, resident(w_in_2d), resident(wo_2d), resident(vec)],
        out_specs=x_spec,
        compiler_params=pltpu.CompilerParams(
            dimension_semantics=("parallel",),
            vmem_limit_bytes=_vmem_limit_bytes()),
    )(x, w_in_2d, wo_2d, vec)


def init_params(key, hidden_dim):
    E = hidden_dim
    k1, k2, k3, k4 = jax.random.split(key, 4)
    s = 1.0 / math.sqrt(E)
    return {
        "in_proj_weight": jax.random.uniform(k1, (3 * E, E), jnp.float32, -s, s),
        "in_proj_bias": jax.random.uniform(k2, (3 * E,), jnp.float32, -s, s),
        "out_proj_weight": jax.random.uniform(k3, (E, E), jnp.float32, -s, s),
        "out_proj_bias": jax.random.uniform(k4, (E,), jnp.float32, -s, s),
        "ln_weight": jnp.ones((E,), jnp.float32),
        "ln_bias": jnp.zeros((E,), jnp.float32),
    }


def _reference(x, params, num_heads, eps=1e-5):
    # Pure-JAX f32 reference of the PyTorch forward (eval mode).
    with jax.default_matmul_precision("float32"):
        B, S, E = x.shape
        Dh = E // num_heads
        w_in, b_in = params["in_proj_weight"], params["in_proj_bias"]
        q = x @ w_in[0:E].T + b_in[0:E]
        k = x @ w_in[E:2 * E].T + b_in[E:2 * E]
        v = x @ w_in[2 * E:].T + b_in[2 * E:]
        q = q.reshape(B, S, num_heads, Dh).transpose(0, 2, 1, 3)
        k = k.reshape(B, S, num_heads, Dh).transpose(0, 2, 1, 3)
        v = v.reshape(B, S, num_heads, Dh).transpose(0, 2, 1, 3)
        s = jnp.einsum("bhqd,bhkd->bhqk", q, k) / math.sqrt(Dh)
        p = jax.nn.softmax(s, axis=-1)
        o = jnp.einsum("bhqk,bhkd->bhqd", p, v).transpose(0, 2, 1, 3).reshape(B, S, E)
        y = o @ params["out_proj_weight"].T + params["out_proj_bias"]
        z = x + y
        mean = z.mean(-1, keepdims=True)
        var = ((z - mean) ** 2).mean(-1, keepdims=True)
        return (z - mean) / jnp.sqrt(var + eps) * params["ln_weight"] + params["ln_bias"]


if __name__ == "__main__":
    # Small shapes; E is a multiple of 128 so output stores are lane-dense.
    B, S, E, H = 2, 16, 128, 8
    key = jax.random.PRNGKey(0)
    kx, kp = jax.random.split(key)
    x = jax.random.normal(kx, (B, S, E), jnp.float32)
    params = init_params(kp, E)

    ref = _reference(x, params, H)

    # Exact path (f32 MXU operands, exact reciprocal): tight tolerance.
    out_f32 = jax.block_until_ready(
        self_attention_layer(x, params, num_heads=H, compute_dtype=jnp.float32))
    assert out_f32.shape == (B, S, E)
    err_f32 = float(jnp.max(jnp.abs(out_f32 - ref)))
    assert err_f32 < 1e-4, f"f32 path max err {err_f32}"

    # Default fast path (bf16 MXU operands, f32 accumulation): relaxed tolerance.
    out_bf16 = jax.block_until_ready(
        self_attention_layer(x, params, num_heads=H))
    assert out_bf16.shape == (B, S, E)
    err_bf16 = float(jnp.max(jnp.abs(out_bf16 - ref)))
    assert err_bf16 < 5e-2, f"bf16 path max err {err_bf16}"

    print("KERNEL_OK")
</pallas_src>

<mosaic_0001>
module attributes {stable_mosaic.version = 11 : i64} {
  func.func @self_attention_kernel(%arg0: i32, %arg1: memref<1x16x128xf32, #tpu.memory_space<vmem>>, %arg2: memref<128x384xf32, #tpu.memory_space<vmem>>, %arg3: memref<128x128xf32, #tpu.memory_space<vmem>>, %arg4: memref<6x128xf32, #tpu.memory_space<vmem>>, %arg5: memref<1x16x128xf32, #tpu.memory_space<vmem>>) attributes {dimension_semantics = [#tpu.dimension_semantics<parallel>], iteration_bounds = array<i64: 2>, scalar_prefetch = 0 : i64, scratch_operands = 0 : i64, tpu.core_type = #tpu.core_type<tc>, window_params = [{transform_indices = @transform_0, window_bounds = array<i64: 1, 16, 128>}, {pipeline_mode = #tpu.pipeline_mode<synchronous>, transform_indices = @transform_1, window_bounds = array<i64: 128, 384>}, {pipeline_mode = #tpu.pipeline_mode<synchronous>, transform_indices = @transform_2, window_bounds = array<i64: 128, 128>}, {pipeline_mode = #tpu.pipeline_mode<synchronous>, transform_indices = @transform_3, window_bounds = array<i64: 6, 128>}, {transform_indices = @transform_4, window_bounds = array<i64: 1, 16, 128>}]} {
    %c0 = arith.constant 0 : index
    %c0_0 = arith.constant 0 : index
    %c0_1 = arith.constant 0 : index
    %0 = vector.load %arg1[%c0, %c0_0, %c0_1] : memref<1x16x128xf32, #tpu.memory_space<vmem>>, vector<1x16x128xf32>
    %1 = vector.shape_cast %0 : vector<1x16x128xf32> to vector<16x128xf32>
    %c0_2 = arith.constant 0 : index
    %c0_3 = arith.constant 0 : index
    %2 = vector.load %arg4[%c0_2, %c0_3] : memref<6x128xf32, #tpu.memory_space<vmem>>, vector<6x128xf32>
    %3 = vector.extract_strided_slice %2 {offsets = [0, 0], sizes = [1, 128], strides = [1, 1]} : vector<6x128xf32> to vector<1x128xf32>
    %4 = vector.extract_strided_slice %2 {offsets = [1, 0], sizes = [1, 128], strides = [1, 1]} : vector<6x128xf32> to vector<1x128xf32>
    %5 = vector.extract_strided_slice %2 {offsets = [2, 0], sizes = [1, 128], strides = [1, 1]} : vector<6x128xf32> to vector<1x128xf32>
    %6 = vector.extract_strided_slice %2 {offsets = [3, 0], sizes = [1, 128], strides = [1, 1]} : vector<6x128xf32> to vector<1x128xf32>
    %7 = vector.extract_strided_slice %2 {offsets = [4, 0], sizes = [1, 128], strides = [1, 1]} : vector<6x128xf32> to vector<1x128xf32>
    %8 = vector.extract_strided_slice %2 {offsets = [5, 0], sizes = [1, 128], strides = [1, 1]} : vector<6x128xf32> to vector<1x128xf32>
    %c0_4 = arith.constant 0 : index
    %c0_5 = arith.constant 0 : index
    %9 = vector.load %arg2[%c0_4, %c0_5] : memref<128x384xf32, #tpu.memory_space<vmem>>, vector<128x384xf32>
    %cst = arith.constant dense<0.000000e+00> : vector<16x384xf32>
    %10 = tpu.matmul %1, %9, %cst {dimension_numbers = #tpu.dot_dimension_numbers<[1], [0], [0], [1], [0, 0, 1, 1], [], []>} : vector<16x128xf32>, vector<128x384xf32>, vector<16x384xf32> -> vector<16x384xf32>
    %11 = vector.extract_strided_slice %10 {offsets = [0, 0], sizes = [16, 128], strides = [1, 1]} : vector<16x384xf32> to vector<16x128xf32>
    %12 = vector.broadcast %3 : vector<1x128xf32> to vector<16x128xf32>
    %13 = arith.addf %11, %12 : vector<16x128xf32>
    %14 = vector.extract_strided_slice %10 {offsets = [0, 128], sizes = [16, 128], strides = [1, 1]} : vector<16x384xf32> to vector<16x128xf32>
    %15 = vector.broadcast %4 : vector<1x128xf32> to vector<16x128xf32>
    %16 = arith.addf %14, %15 : vector<16x128xf32>
    %17 = vector.extract_strided_slice %10 {offsets = [0, 256], sizes = [16, 128], strides = [1, 1]} : vector<16x384xf32> to vector<16x128xf32>
    %18 = vector.broadcast %5 : vector<1x128xf32> to vector<16x128xf32>
    %19 = arith.addf %17, %18 : vector<16x128xf32>
    %20 = vector.extract_strided_slice %13 {offsets = [0, 0], sizes = [16, 16], strides = [1, 1]} : vector<16x128xf32> to vector<16x16xf32>
    %21 = vector.extract_strided_slice %13 {offsets = [0, 16], sizes = [16, 16], strides = [1, 1]} : vector<16x128xf32> to vector<16x16xf32>
    %22 = vector.extract_strided_slice %13 {offsets = [0, 32], sizes = [16, 16], strides = [1, 1]} : vector<16x128xf32> to vector<16x16xf32>
    %23 = vector.extract_strided_slice %13 {offsets = [0, 48], sizes = [16, 16], strides = [1, 1]} : vector<16x128xf32> to vector<16x16xf32>
    %24 = vector.extract_strided_slice %13 {offsets = [0, 64], sizes = [16, 16], strides = [1, 1]} : vector<16x128xf32> to vector<16x16xf32>
    %25 = vector.extract_strided_slice %13 {offsets = [0, 80], sizes = [16, 16], strides = [1, 1]} : vector<16x128xf32> to vector<16x16xf32>
    %26 = vector.extract_strided_slice %13 {offsets = [0, 96], sizes = [16, 16], strides = [1, 1]} : vector<16x128xf32> to vector<16x16xf32>
    %27 = vector.extract_strided_slice %13 {offsets = [0, 112], sizes = [16, 16], strides = [1, 1]} : vector<16x128xf32> to vector<16x16xf32>
    %28 = vector.shape_cast %20 : vector<16x16xf32> to vector<1x16x16xf32>
    %29 = vector.shape_cast %21 : vector<16x16xf32> to vector<1x16x16xf32>
    %30 = vector.shape_cast %22 : vector<16x16xf32> to vector<1x16x16xf32>
    %31 = vector.shape_cast %23 : vector<16x16xf32> to vector<1x16x16xf32>
    %32 = vector.shape_cast %24 : vector<16x16xf32> to vector<1x16x16xf32>
    %33 = vector.shape_cast %25 : vector<16x16xf32> to vector<1x16x16xf32>
    %34 = vector.shape_cast %26 : vector<16x16xf32> to vector<1x16x16xf32>
    %35 = vector.shape_cast %27 : vector<16x16xf32> to vector<1x16x16xf32>
    %36 = tpu.concatenate %28, %29, %30, %31, %32, %33, %34, %35 in 0 : vector<1x16x16xf32>, vector<1x16x16xf32>, vector<1x16x16xf32>, vector<1x16x16xf32>, vector<1x16x16xf32>, vector<1x16x16xf32>, vector<1x16x16xf32>, vector<1x16x16xf32> -> vector<8x16x16xf32>
    %37 = vector.extract_strided_slice %16 {offsets = [0, 0], sizes = [16, 16], strides = [1, 1]} : vector<16x128xf32> to vector<16x16xf32>
    %38 = vector.extract_strided_slice %16 {offsets = [0, 16], sizes = [16, 16], strides = [1, 1]} : vector<16x128xf32> to vector<16x16xf32>
    %39 = vector.extract_strided_slice %16 {offsets = [0, 32], sizes = [16, 16], strides = [1, 1]} : vector<16x128xf32> to vector<16x16xf32>
    %40 = vector.extract_strided_slice %16 {offsets = [0, 48], sizes = [16, 16], strides = [1, 1]} : vector<16x128xf32> to vector<16x16xf32>
    %41 = vector.extract_strided_slice %16 {offsets = [0, 64], sizes = [16, 16], strides = [1, 1]} : vector<16x128xf32> to vector<16x16xf32>
    %42 = vector.extract_strided_slice %16 {offsets = [0, 80], sizes = [16, 16], strides = [1, 1]} : vector<16x128xf32> to vector<16x16xf32>
    %43 = vector.extract_strided_slice %16 {offsets = [0, 96], sizes = [16, 16], strides = [1, 1]} : vector<16x128xf32> to vector<16x16xf32>
    %44 = vector.extract_strided_slice %16 {offsets = [0, 112], sizes = [16, 16], strides = [1, 1]} : vector<16x128xf32> to vector<16x16xf32>
    %45 = vector.shape_cast %37 : vector<16x16xf32> to vector<1x16x16xf32>
    %46 = vector.shape_cast %38 : vector<16x16xf32> to vector<1x16x16xf32>
    %47 = vector.shape_cast %39 : vector<16x16xf32> to vector<1x16x16xf32>
    %48 = vector.shape_cast %40 : vector<16x16xf32> to vector<1x16x16xf32>
    %49 = vector.shape_cast %41 : vector<16x16xf32> to vector<1x16x16xf32>
    %50 = vector.shape_cast %42 : vector<16x16xf32> to vector<1x16x16xf32>
    %51 = vector.shape_cast %43 : vector<16x16xf32> to vector<1x16x16xf32>
    %52 = vector.shape_cast %44 : vector<16x16xf32> to vector<1x16x16xf32>
    %53 = tpu.concatenate %45, %46, %47, %48, %49, %50, %51, %52 in 0 : vector<1x16x16xf32>, vector<1x16x16xf32>, vector<1x16x16xf32>, vector<1x16x16xf32>, vector<1x16x16xf32>, vector<1x16x16xf32>, vector<1x16x16xf32>, vector<1x16x16xf32> -> vector<8x16x16xf32>
    %54 = vector.extract_strided_slice %19 {offsets = [0, 0], sizes = [16, 16], strides = [1, 1]} : vector<16x128xf32> to vector<16x16xf32>
    %55 = vector.extract_strided_slice %19 {offsets = [0, 16], sizes = [16, 16], strides = [1, 1]} : vector<16x128xf32> to vector<16x16xf32>
    %56 = vector.extract_strided_slice %19 {offsets = [0, 32], sizes = [16, 16], strides = [1, 1]} : vector<16x128xf32> to vector<16x16xf32>
    %57 = vector.extract_strided_slice %19 {offsets = [0, 48], sizes = [16, 16], strides = [1, 1]} : vector<16x128xf32> to vector<16x16xf32>
    %58 = vector.extract_strided_slice %19 {offsets = [0, 64], sizes = [16, 16], strides = [1, 1]} : vector<16x128xf32> to vector<16x16xf32>
    %59 = vector.extract_strided_slice %19 {offsets = [0, 80], sizes = [16, 16], strides = [1, 1]} : vector<16x128xf32> to vector<16x16xf32>
    %60 = vector.extract_strided_slice %19 {offsets = [0, 96], sizes = [16, 16], strides = [1, 1]} : vector<16x128xf32> to vector<16x16xf32>
    %61 = vector.extract_strided_slice %19 {offsets = [0, 112], sizes = [16, 16], strides = [1, 1]} : vector<16x128xf32> to vector<16x16xf32>
    %62 = vector.shape_cast %54 : vector<16x16xf32> to vector<1x16x16xf32>
    %63 = vector.shape_cast %55 : vector<16x16xf32> to vector<1x16x16xf32>
    %64 = vector.shape_cast %56 : vector<16x16xf32> to vector<1x16x16xf32>
    %65 = vector.shape_cast %57 : vector<16x16xf32> to vector<1x16x16xf32>
    %66 = vector.shape_cast %58 : vector<16x16xf32> to vector<1x16x16xf32>
    %67 = vector.shape_cast %59 : vector<16x16xf32> to vector<1x16x16xf32>
    %68 = vector.shape_cast %60 : vector<16x16xf32> to vector<1x16x16xf32>
    %69 = vector.shape_cast %61 : vector<16x16xf32> to vector<1x16x16xf32>
    %70 = tpu.concatenate %62, %63, %64, %65, %66, %67, %68, %69 in 0 : vector<1x16x16xf32>, vector<1x16x16xf32>, vector<1x16x16xf32>, vector<1x16x16xf32>, vector<1x16x16xf32>, vector<1x16x16xf32>, vector<1x16x16xf32>, vector<1x16x16xf32> -> vector<8x16x16xf32>
    "tpu.trace_start"() <{level = 10 : i32, message = "hqd,hkd->hqk"}> : () -> ()
    %cst_6 = arith.constant dense<0.000000e+00> : vector<8x16x16xf32>
    %71 = tpu.matmul %36, %53, %cst_6 {dimension_numbers = #tpu.dot_dimension_numbers<[2], [2], [1], [1], [0, 0, 0, 1, 1, 1], [0], [0]>} : vector<8x16x16xf32>, vector<8x16x16xf32>, vector<8x16x16xf32> -> vector<8x16x16xf32>
    "tpu.trace_stop"() : () -> ()
    %cst_7 = arith.constant dense<0xFF800000> : vector<8x16xf32>
    %72 = vector.multi_reduction <maximumf>, %71, %cst_7 [2] : vector<8x16x16xf32> to vector<8x16xf32>
    %73 = vector.shape_cast %72 : vector<8x16xf32> to vector<8x16x1xf32>
    %74 = vector.broadcast %73 : vector<8x16x1xf32> to vector<8x16x16xf32>
    %75 = arith.subf %71, %74 : vector<8x16x16xf32>
    %76 = math.exp %75 : vector<8x16x16xf32>
    %cst_8 = arith.constant dense<0.000000e+00> : vector<8x16xf32>
    %77 = vector.multi_reduction <add>, %76, %cst_8 [2] : vector<8x16x16xf32> to vector<8x16xf32>
    %78 = vector.shape_cast %77 : vector<8x16xf32> to vector<8x16x1xf32>
    %79 = tpu.reciprocal %78 : vector<8x16x1xf32> -> vector<8x16x1xf32>
    %80 = vector.broadcast %79 : vector<8x16x1xf32> to vector<8x16x16xf32>
    %81 = arith.mulf %76, %80 : vector<8x16x16xf32>
    "tpu.trace_start"() <{level = 10 : i32, message = "hqk,hkd->hqd"}> : () -> ()
    %cst_9 = arith.constant dense<0.000000e+00> : vector<8x16x16xf32>
    %82 = tpu.matmul %81, %70, %cst_9 {dimension_numbers = #tpu.dot_dimension_numbers<[2], [1], [1], [2], [0, 0, 0, 1, 1, 2], [0], [0]>} : vector<8x16x16xf32>, vector<8x16x16xf32>, vector<8x16x16xf32> -> vector<8x16x16xf32>
    "tpu.trace_stop"() : () -> ()
    %83 = vector.extract_strided_slice %82 {offsets = [0, 0, 0], sizes = [1, 16, 16], strides = [1, 1, 1]} : vector<8x16x16xf32> to vector<1x16x16xf32>
    %84 = vector.shape_cast %83 : vector<1x16x16xf32> to vector<16x16xf32>
    %85 = vector.extract_strided_slice %82 {offsets = [1, 0, 0], sizes = [1, 16, 16], strides = [1, 1, 1]} : vector<8x16x16xf32> to vector<1x16x16xf32>
    %86 = vector.shape_cast %85 : vector<1x16x16xf32> to vector<16x16xf32>
    %87 = vector.extract_strided_slice %82 {offsets = [2, 0, 0], sizes = [1, 16, 16], strides = [1, 1, 1]} : vector<8x16x16xf32> to vector<1x16x16xf32>
    %88 = vector.shape_cast %87 : vector<1x16x16xf32> to vector<16x16xf32>
    %89 = vector.extract_strided_slice %82 {offsets = [3, 0, 0], sizes = [1, 16, 16], strides = [1, 1, 1]} : vector<8x16x16xf32> to vector<1x16x16xf32>
    %90 = vector.shape_cast %89 : vector<1x16x16xf32> to vector<16x16xf32>
    %91 = vector.extract_strided_slice %82 {offsets = [4, 0, 0], sizes = [1, 16, 16], strides = [1, 1, 1]} : vector<8x16x16xf32> to vector<1x16x16xf32>
    %92 = vector.shape_cast %91 : vector<1x16x16xf32> to vector<16x16xf32>
    %93 = vector.extract_strided_slice %82 {offsets = [5, 0, 0], sizes = [1, 16, 16], strides = [1, 1, 1]} : vector<8x16x16xf32> to vector<1x16x16xf32>
    %94 = vector.shape_cast %93 : vector<1x16x16xf32> to vector<16x16xf32>
    %95 = vector.extract_strided_slice %82 {offsets = [6, 0, 0], sizes = [1, 16, 16], strides = [1, 1, 1]} : vector<8x16x16xf32> to vector<1x16x16xf32>
    %96 = vector.shape_cast %95 : vector<1x16x16xf32> to vector<16x16xf32>
    %97 = vector.extract_strided_slice %82 {offsets = [7, 0, 0], sizes = [1, 16, 16], strides = [1, 1, 1]} : vector<8x16x16xf32> to vector<1x16x16xf32>
    %98 = vector.shape_cast %97 : vector<1x16x16xf32> to vector<16x16xf32>
    %99 = tpu.concatenate %84, %86, %88, %90, %92, %94, %96, %98 in 1 : vector<16x16xf32>, vector<16x16xf32>, vector<16x16xf32>, vector<16x16xf32>, vector<16x16xf32>, vector<16x16xf32>, vector<16x16xf32>, vector<16x16xf32> -> vector<16x128xf32>
    %c0_10 = arith.constant 0 : index
    %c0_11 = arith.constant 0 : index
    %100 = vector.load %arg3[%c0_10, %c0_11] : memref<128x128xf32, #tpu.memory_space<vmem>>, vector<128x128xf32>
    %cst_12 = arith.constant dense<0.000000e+00> : vector<16x128xf32>
    %101 = tpu.matmul %99, %100, %cst_12 {dimension_numbers = #tpu.dot_dimension_numbers<[1], [0], [0], [1], [0, 0, 1, 1], [], []>} : vector<16x128xf32>, vector<128x128xf32>, vector<16x128xf32> -> vector<16x128xf32>
    %102 = arith.addf %1, %101 : vector<16x128xf32>
    %103 = vector.broadcast %6 : vector<1x128xf32> to vector<16x128xf32>
    %104 = arith.addf %102, %103 : vector<16x128xf32>
    %cst_13 = arith.constant dense<0.000000e+00> : vector<16xf32>
    %105 = vector.multi_reduction <add>, %104, %cst_13 [1] : vector<16x128xf32> to vector<16xf32>
    %106 = vector.shape_cast %105 : vector<16xf32> to vector<16x1xf32>
    %cst_14 = arith.constant 1.280000e+02 : f32
    %107 = vector.broadcast %cst_14 : f32 to vector<16x1xf32>
    %108 = arith.divf %106, %107 : vector<16x1xf32>
    %109 = vector.broadcast %108 : vector<16x1xf32> to vector<16x128xf32>
    %110 = arith.subf %104, %109 : vector<16x128xf32>
    %111 = arith.mulf %110, %110 : vector<16x128xf32>
    %cst_15 = arith.constant dense<0.000000e+00> : vector<16xf32>
    %112 = vector.multi_reduction <add>, %111, %cst_15 [1] : vector<16x128xf32> to vector<16xf32>
    %113 = vector.shape_cast %112 : vector<16xf32> to vector<16x1xf32>
    %cst_16 = arith.constant 1.280000e+02 : f32
    %114 = vector.broadcast %cst_16 : f32 to vector<16x1xf32>
    %115 = arith.divf %113, %114 : vector<16x1xf32>
    %116 = vector.broadcast %108 : vector<16x1xf32> to vector<16x128xf32>
    %117 = arith.subf %104, %116 : vector<16x128xf32>
    %cst_17 = arith.constant 9.99999974E-6 : f32
    %118 = vector.broadcast %cst_17 : f32 to vector<16x1xf32>
    %119 = arith.addf %115, %118 : vector<16x1xf32>
    %120 = math.rsqrt %119 : vector<16x1xf32>
    %121 = vector.broadcast %120 : vector<16x1xf32> to vector<16x128xf32>
    %122 = arith.mulf %117, %121 : vector<16x128xf32>
    %123 = vector.broadcast %7 : vector<1x128xf32> to vector<16x128xf32>
    %124 = arith.mulf %122, %123 : vector<16x128xf32>
    %125 = vector.broadcast %8 : vector<1x128xf32> to vector<16x128xf32>
    %126 = arith.addf %124, %125 : vector<16x128xf32>
    %c0_18 = arith.constant 0 : index
    %c0_19 = arith.constant 0 : index
    %c0_20 = arith.constant 0 : index
    %127 = vector.load %arg5[%c0_18, %c0_19, %c0_20] : memref<1x16x128xf32, #tpu.memory_space<vmem>>, vector<1x16x128xf32>
    %128 = vector.shape_cast %127 : vector<1x16x128xf32> to vector<16x128xf32>
    %129 = vector.shape_cast %126 : vector<16x128xf32> to vector<1x16x128xf32>
    tpu.vector_store %arg5[%c0_18, %c0_19, %c0_20], %129 {strides = array<i32>} : memref<1x16x128xf32, #tpu.memory_space<vmem>>, vector<1x16x128xf32>,
    return
  }
  func.func @transform_0(%arg0: i32) -> (i32, i32, i32) {
    %c0_i32 = arith.constant 0 : i32
    %c0_i32_0 = arith.constant 0 : i32
    %c0_i32_1 = arith.constant 0 : i32
    return %arg0, %c0_i32, %c0_i32_0 : i32, i32, i32
  }
  func.func @transform_1(%arg0: i32) -> (i32, i32) {
    %c0_i32 = arith.constant 0 : i32
    %c0_i32_0 = arith.constant 0 : i32
    %c0_i32_1 = arith.constant 0 : i32
    return %c0_i32, %c0_i32_0 : i32, i32
  }
  func.func @transform_2(%arg0: i32) -> (i32, i32) {
    %c0_i32 = arith.constant 0 : i32
    %c0_i32_0 = arith.constant 0 : i32
    %c0_i32_1 = arith.constant 0 : i32
    return %c0_i32, %c0_i32_0 : i32, i32
  }
  func.func @transform_3(%arg0: i32) -> (i32, i32) {
    %c0_i32 = arith.constant 0 : i32
    %c0_i32_0 = arith.constant 0 : i32
    %c0_i32_1 = arith.constant 0 : i32
    return %c0_i32, %c0_i32_0 : i32, i32
  }
  func.func @transform_4(%arg0: i32) -> (i32, i32, i32) {
    %c0_i32 = arith.constant 0 : i32
    %c0_i32_0 = arith.constant 0 : i32
    %c0_i32_1 = arith.constant 0 : i32
    return %arg0, %c0_i32, %c0_i32_0 : i32, i32, i32
  }
}

</mosaic_0001>

<bundles_post_ra>
// kernel: tpu_custom_call.1
= control target key start
LH: loop header
LB: loop body
LE: loop exit
PB: predicated region body
PF: predicated region fallthrough
CT: control target
= control target key end

     0   :  { %9 = vsyncpa [#allocation3], 0  ;;  %s3738_s0 = inlined_call_operand.hbm [shape: f32[2,16,128], index: 0, kind: input, shape index: {}]   ;;  %s3739_s1 = inlined_call_operand.hbm [shape: f32[128,384], index: 1, kind: input, shape index: {}]   ;;  %s3740_s2 = inlined_call_operand.hbm [shape: f32[128,128], index: 2, kind: input, shape index: {}]   ;;  %s3741_s3 = inlined_call_operand.hbm [shape: f32[6,128], index: 3, kind: input, shape index: {}]   ;;  %s3742_s4 = inlined_call_operand.hbm [shape: f32[2,16,128], index: 4, kind: output, shape index: {}]  }
   0x1   :  { %11 = vsyncpa [#allocation3 + $0x1], 0 }
   0x2   :  { %12 = vsyncpa [#allocation6], 0 }
   0x3   :  { %13 = vsyncpa [#allocation9], 0 }
   0x4   :  { %14 = vsyncpa [#allocation4], 0 }
   0x5   :  { %16 = vsyncpa [#allocation4 + $0x1], 0  ;;  %s3173_s15 = smov 0   ;;  %s3175_s16 = smov 0  }
   0x6   :  { %s3177_s17 = smov 0   ;;  %s3179_s18 = smov 0  }
   0x7 LB: > { %s3194_s19 = sadd.s32 4294967295, %s3127_s18   ;;  %s2400_s20 = sadd.s32 4294967294, %s3127_s18   ;;  %s3127_s18 = sphi %s3179_s18, %s3766_s18   ;;  %s3123_s17 = sphi %s3177_s17, %s3765_s17   ;;  %s3119_s16 = sphi %s3175_s16, %s3764_s16   ;;  %s3115_s15 = sphi %s3173_s15, %s3763_s15  }
   0x8   : > { %p42_p0 = scmp.ne.s32.totalorder %s3119_s16, %s3115_s15  ;;  %p3743_p1 = scmp.eq.s32.totalorder %s3194_s19, 0 }
   0x9   : > { %p135_p3 = scmp.eq.s32.totalorder %s2400_s20, 1  ;;  %p2401_p5 = scmp.ge.s32.totalorder %s3127_s18, 1 }
   0xa   : > { %p3203_p4 = por %p3743_p1, %p42_p0  ;;  %p142_p7 = scmp.lt.s32.totalorder %s3127_s18, 3 }
   0xb   : > { %p3208_p6 = por %p135_p3, %p42_p0  ;;  %s3129_s24 = smov [#allocation5]  }
   0xc   : > { %s3747_s21 = scalar_select %p3203_p4, 1, 0 }
   0xd   : > { %s3748_s22 = scalar_select %p3208_p6, 1, 0 }
   0xe   : > { %p3213_p8 = pnand %p2401_p5, %p142_p7  ;;  %s154_s25 = sshll.u32 %s3129_s24, 4  ;;  %s155_s25 = int_to_ptr.vmem [resolvable:$true] %s154_s25 }
   0xf   : > { %s3130_s27 = smov [#allocation7]   ;;  %s2960_s29 = scalar_lea.vmem %s155_s25, 6144 }
  0x10   : > { %s3749_s23 = scalar_select %p3213_p8, 1, 0 }
  0x11   : > { %p2768_p9 = pneg %p3213_p8  ;;  %s167_s28 = sshll.u32 %s3130_s27, 4  ;;  %s168_s28 = int_to_ptr.vmem [resolvable:$true] %s167_s28 }
  0x12   : > { %p2961_p13 = scmp.ne.s32.totalorder %s155_s25, %s2960_s29  ;;  %p2968_p5 = scmp.lt.s32.totalorder %s155_s25, %s155_s25 }
  0x13   : > { %p3222_p11 = pnand %p2768_p9, %p3743_p1  ;;  %p2969_p7 = scmp.lt.s32.totalorder %s2960_s29, %s2960_s29 }
  0x15   : > { %p2951_p12 = pneg %p3222_p11  ;;  %p2970_p10 = por %p2969_p7, %p2968_p5 }
  0x17   : > { %p2963_p0 = pnand %p2961_p13, %p2951_p12 }
  0x19   : > { %p2964_p3 = pneg %p2963_p0 }
  0x1b   : > { %p2971_p9 = pnand %p2970_p10, %p2964_p3 }
  0x1d   : > { %2974 = shalt.err (!%p2971_p9)
}
  0x1e   : > { %s3131_s30 = smov 384   ;;  %s3132_s5 = smov 24  }
  0x1f   : > { %2771 = dma.hbm_to_vmem [thread:$0]  (!%p3222_p11), %s3739_s1, 6144, %s155_s25, [#allocation6], %s3131_s30, %s3131_s30, %s3132_s5  }
  0x20   : > { %s2986_s8 = scalar_lea.vmem %s168_s28, 2048  ;;  %p2994_p2 = scmp.lt.s32.totalorder %s168_s28, %s168_s28 }
  0x21   : > { %p2987_p1 = scmp.ne.s32.totalorder %s168_s28, %s2986_s8  ;;  %p2995_p6 = scmp.lt.s32.totalorder %s2986_s8, %s2986_s8 }
  0x23   : > { %p2989_p13 = pnand %p2987_p1, %p2951_p12  ;;  %p2996_p5 = por %p2995_p6, %p2994_p2 }
  0x25   : > { %p2990_p0 = pneg %p2989_p13 }
  0x27   : > { %p2997_p10 = pnand %p2996_p5, %p2990_p0 }
  0x29   : > { %3000 = shalt.err (!%p2997_p10)
}
  0x2a   : > { %s3133_s9 = smov 128   ;;  %s3134_s10 = smov 8  }
  0x2b   : > { %2774 = dma.hbm_to_vmem [thread:$0]  (!%p3222_p11), %s3740_s2, 2048, %s168_s28, [#allocation6], %s3133_s9, %s3133_s9, %s3134_s10  }
  0x2c   : > { %s3135_s13 = smov [#allocation8]   ;;  %s3248_s20 = sadd.s32 1, %s3127_s18  }
  0x2d   : > { %s181_s14 = sshll.u32 %s3135_s13, 4  ;;  %s182_s14 = int_to_ptr.vmem [resolvable:$true] %s181_s14 }
  0x2e   : > { %s3012_s24 = scalar_lea.vmem %s182_s14, 128  ;;  %p3020_p3 = scmp.lt.s32.totalorder %s182_s14, %s182_s14 }
  0x2f   : > { %p3013_p1 = scmp.ne.s32.totalorder %s182_s14, %s3012_s24  ;;  %p3021_p7 = scmp.lt.s32.totalorder %s3012_s24, %s3012_s24 }
  0x31   : > { %p3015_p2 = pnand %p3013_p1, %p2951_p12  ;;  %p3022_p9 = por %p3021_p7, %p3020_p3 }
  0x33   : > { %p3016_p6 = pneg %p3015_p2 }
  0x35   : > { %p3023_p13 = pnand %p3022_p9, %p3016_p6 }
  0x37   : > { %3026 = shalt.err (!%p3023_p13)
}
  0x38   : > { %2777 = dma.hbm_to_vmem [thread:$0]  (!%p3222_p11), %s3741_s3, 128, %s182_s14, [#allocation9]  }
  0x39   : > { %s26_s28 = ssub.s32 %s3127_s18, %s3248_s20  ;;  %s29_s29 = sadd.s32 1, %s3123_s17 }
  0x3a   : > { %p27_p12 = scmp.eq.s32.totalorder %s26_s28, 0  ;;  %p36_p0 = scmp.ne.s32.totalorder %s3123_s17, %s3119_s16 }
  0x3b   : > { %p37_p5 = scmp.eq.s32.totalorder %s3127_s18, 0  ;;  %p2789_p10 = scmp.lt.s32.totalorder %s3127_s18, 2 }
  0x3c   : > { %s3266_s26 = scalar_select %p27_p12, %s3123_s17, %s29_s29  }
  0x3d   : > { %p38_p1 = por %p37_p5, %p36_p0  ;;  %p3751_p2 = scmp.eq.s32.totalorder %s3194_s19, 1 }
  0x3e   : > { %s192_s5 = sand.u32 1, %s3123_s17   ;;  %s2468_s6 = sshll.u32 %s3127_s18, 8 }
  0x3f   : > { %p3270_p6 = por %p3751_p2, %p36_p0  ;;  %s2406_s7 = sshll.u32 %s192_s5, 4 }
  0x40   : > { %s3279_s12 = scalar_lea.hbm %s3738_s0, %s2468_s6  ;;  %s196_s13 = scalar_lea.vmem [#allocation2], %s2406_s7 }
  0x41   : > { %s3752_s30 = scalar_select %p3270_p6, 1, 0 }
  0x42   : > { %s203_s14 = sshll.u32 %s196_s13, 4  ;;  %p3281_p11 = pnand %p2789_p10, %p38_p1  ;;  %s3285_s14 = int_to_ptr.vmem [resolvable:$true] %s203_s14 }
  0x43   : > { %s3287_s25 = scalar_lea.sflag [#allocation3], %s192_s5  ;;  %s3027_s27 = scalar_lea.hbm %s3279_s12, 256 }
  0x44   : > { %p3028_p3 = scmp.ne.s32.totalorder %s3279_s12, %s3027_s27  ;;  %p3029_p7 = pneg %p3281_p11 }
  0x45   : > { %s3032_s6 = scalar_lea.hbm %s3738_s0, 512  ;;  %p3033_p12 = scmp.lt.s32.totalorder %s3279_s12, %s3738_s0 }
  0x46   : > { %p3030_p9 = pnand %p3029_p7, %p3028_p3  ;;  %p3034_p0 = scmp.lt.s32.totalorder %s3032_s6, %s3027_s27 }
  0x48   : > { %p3031_p13 = pneg %p3030_p9  ;;  %p3035_p5 = por %p3034_p0, %p3033_p12 }
  0x4a   : > { %p3036_p10 = pnand %p3035_p5, %p3031_p13 }
  0x4c   : > { %3039 = shalt.err (!%p3036_p10)
}
  0x4d   : > { %s3040_s5 = scalar_lea.vmem %s3285_s14, 256  ;;  %s3136_s11 = smov [#allocation2]  }
  0x4e   : > { %p3041_p1 = scmp.ne.s32.totalorder %s3285_s14, %s3040_s5  ;;  %s3045_s13 = sshll.u32 %s3136_s11, 4  ;;  %s3046_s13 = int_to_ptr.vmem [resolvable:$false] %s3045_s13 }
  0x4f   : > { %s3047_s28 = scalar_lea.vmem %s3046_s13, 512  ;;  %p3048_p9 = scmp.lt.s32.totalorder %s3285_s14, %s3046_s13 }
  0x50   : > { %p3043_p2 = pnand %p3041_p1, %p3029_p7  ;;  %p3049_p6 = scmp.lt.s32.totalorder %s3047_s28, %s3040_s5 }
  0x52   : > { %p3044_p3 = pneg %p3043_p2  ;;  %p3050_p4 = por %p3049_p6, %p3048_p9 }
  0x54   : > { %p3051_p8 = pnand %p3050_p4, %p3044_p3 }
  0x56   : > { %3054 = shalt.err (!%p3051_p8)
}
  0x57   : > { %2781 = dma.hbm_to_vmem [thread:$0]  (!%p3281_p11), %s3279_s12, 256, %s3285_s14, %s3287_s25, %s3133_s9, %s3133_s9, %s3134_s10  }
  0x58   : > { %p3754_p7 = scmp.ne.s32.totalorder %s3749_s23, 0 }
  0x59   : > { %s3314_s27 = sand.u32 (!%p3754_p7), 1, %s3119_s16   ;;  %p3755_p4 = scmp.ne.s32.totalorder (!%p3754_p7), %s3747_s21, 0 }
  0x5a   : > { %215 = sbr.rel (%p3754_p7) target bundleno = 1899 (0x76b), region = 36  ;;  %s2410_s29 = sshll.u32 (!%p3754_p7), %s3314_s27, 4 }
  0x5b   : > { %s218_s6 = scalar_lea.sflag (!%p3754_p7), [#allocation3], %s3314_s27  ;;  %s3320_s24 = scalar_lea.vmem (!%p3754_p7), [#allocation2], %s2410_s29 }
  0x5f   : > { %3098 = dma.done.wait (%p3755_p4), %s218_s6, 256  }
  0x60   : > { %3100 = vsyncadd (%p3755_p4), %s218_s6, 4294967040  ;;  %p3756_p8 = scmp.eq.s32.totalorder %s3194_s19, 0 }
  0x62   : > { %3102 = dma.done.wait (%p3756_p8), [#allocation6], 8192   ;;  %p3757_p6 = pmov %p3756_p8 }
  0x64   : > { %3104 = vsyncadd (%p3757_p6), [#allocation6], 4294959104  ;;  %p3758_p11 = pmov %p3757_p6 }
  0x65   : > { %p3759_p13 = pmov %p3757_p6 }
  0x66   : > { %3106 = dma.done.wait (%p3758_p11), [#allocation9], 128  }
  0x67   : > { %3108 = vsyncadd (%p3759_p13), [#allocation9], 4294967168  ;;  %v3137_v0 = vmov 0.0   ;;  %v307_v1 = vld [vmem:[#allocation5 + $0x170] sm:$0xff]  ;;  %v306_v2 = vld [vmem:[#allocation5 + $0x168] sm:$0xff]  ;;  %v461_v51 = vlaneseq  ;;  %vm583_vm0 = vcmask 130048  }
  0x68   : > { %373 = vmatprep.mubr.f32.mxu0 %v3137_v0  ;;  %v304_v3 = vld [vmem:[#allocation5 + $0x158] sm:$0xff]  ;;  %309 = vmatprep.subr.mxu0 %v307_v1  ;;  %v303_v4 = vld [vmem:[#allocation5 + $0x150] sm:$0xff]  ;;  %v301_v5 = vld [vmem:[#allocation5 + $0x140] sm:$0xff]  ;;  %s3138_s21 = smov 96   ;;  %s3139_s23 = smov 112   ;;  %vm2130_vm1 = vcmask 261120  }
  0x69   : > { %310 = vmatpush1.msra.mxu0 %v306_v2  ;;  %v300_v6 = vld [vmem:[#allocation5 + $0x138] sm:$0xff]  ;;  %v298_v7 = vld [vmem:[#allocation5 + $0x128] sm:$0xff]  ;;  %v297_v8 = vld [vmem:[#allocation5 + $0x120] sm:$0xff]  ;;  %v3342_v52 = vshrl.u32 %v461_v51, 7  ;;  %s3140_s9 = smov 80   ;;  %s3141_s10 = smov 64  }
  0x6a   : > { %311 = vmatprep.subr.mxu0 %v304_v3  ;;  %v295_v9 = vld [vmem:[#allocation5 + $0x110] sm:$0xff]  ;;  %v294_v10 = vld [vmem:[#allocation5 + $0x108] sm:$0xff]  ;;  %v292_v11 = vld [vmem:[#allocation5 + $0xf8] sm:$0xff]  ;;  %s3142_s12 = smov 48   ;;  %s3143_s14 = smov 32   ;;  %vm2133_vm2 = vcmask 392192  }
  0x6b   : > { %312 = vmatpush1.msra.mxu0 %v303_v4  ;;  %v291_v12 = vld [vmem:[#allocation5 + $0xf0] sm:$0xff]  ;;  %v289_v13 = vld [vmem:[#allocation5 + $0xe0] sm:$0xff]  ;;  %v288_v15 = vld [vmem:[#allocation5 + $0xd8] sm:$0xff]  ;;  %v463_v53 = vsub.s32 0, %v3342_v52  ;;  %v469_v56 = vsub.s32 1, %v3342_v52  ;;  %s3144_s25 = smov 16  }
  0x6c   : > { %313 = vmatprep.subr.mxu0 %v301_v5  ;;  %v3336_v14 = vld [vmem:[%s3320_s24] sm:$0xff]  ;;  %v308_v16 = vld [vmem:[#allocation5 + $0x178] sm:$0xff]  ;;  %v286_v18 = vld [vmem:[#allocation5 + $0xc8] sm:$0xff]  ;;  %v475_v2 = vsub.s32 2, %v3342_v52  ;;  %vm2136_vm3 = vcmask 523264   ;;  %vm2139_vm4 = vcmask 654336  }
  0x6d   : > { %314 = vmatpush1.msra.mxu0 %v300_v6  ;;  %v305_v17 = vld [vmem:[#allocation5 + $0x160] sm:$0xff]  ;;  %2602 = vmatprep.mubr.f32.mxu1 %v3336_v14  ;;  %v302_v20 = vld [vmem:[#allocation5 + $0x148] sm:$0xff]  ;;  %v283_v21 = vld [vmem:[#allocation5 + $0xb0] sm:$0xff]  ;;  %vm2142_vm5 = vcmask 785408   ;;  %vm2145_vm6 = vcmask 916480   ;;  %s2469_s7 = sshll.u32 %s3194_s19, 8 }
  0x6e   : > { %315 = vmatprep.subr.mxu0 %v298_v7  ;;  %2570 = vmatprep.subr.mxu1 %v308_v16  ;;  %v285_v19 = vld [vmem:[#allocation5 + $0xc0] sm:$0xff]  ;;  %v282_v22 = vld [vmem:[#allocation5 + $0xa8] sm:$0xff]  ;;  %v299_v23 = vld [vmem:[#allocation5 + $0x130] sm:$0xff]  ;;  %s257_s8 = scalar_lea.vmem [#allocation10], %s2410_s29  ;;  %s3693_s28 = scalar_lea.hbm %s3742_s4, %s2469_s7 }
  0x6f   : > { %316 = vmatpush1.msra.mxu0 %v297_v8  ;;  %2571 = vmatpush3.msra.mxu1 %v308_v16  ;;  %v280_v24 = vld [vmem:[#allocation5 + $0x98] sm:$0xff]  ;;  %v279_v25 = vld [vmem:[#allocation5 + $0x90] sm:$0xff]  ;;  %v277_v27 = vld [vmem:[#allocation5 + $0x80] sm:$0xff]  ;;  %s2298_s5 = sshll.u32 %s257_s8, 4  ;;  %s2285_s6 = scalar_lea.sflag [#allocation4], %s3314_s27  ;;  %s3695_s5 = int_to_ptr.vmem [resolvable:$true] %s2298_s5 }
  0x70   : > { %317 = vmatprep.subr.mxu0 %v295_v9  ;;  %2572 = vmatprep.subr.mxu1 %v305_v17  ;;  %v296_v26 = vld [vmem:[#allocation5 + $0x118] sm:$0xff]  ;;  %v293_v29 = vld [vmem:[#allocation5 + $0x100] sm:$0xff]  ;;  %v274_v30 = vld [vmem:[#allocation5 + $0x68] sm:$0xff]  ;;  %s3055_s19 = scalar_lea.vmem %s3695_s5, 256  ;;  %p3760_p0 = scmp.ne.s32.totalorder %s3752_s30, 0 }
  0x71   : > { %318 = vmatpush1.msra.mxu0 %v294_v10  ;;  %2573 = vmatpush3.msra.mxu1 %v305_v17  ;;  %v276_v28 = vld [vmem:[#allocation5 + $0x78] sm:$0xff]  ;;  %v273_v31 = vld [vmem:[#allocation5 + $0x60] sm:$0xff]  ;;  %v290_v32 = vld [vmem:[#allocation5 + $0xe8] sm:$0xff]  ;;  %p3056_p12 = scmp.ne.s32.totalorder %s3695_s5, %s3055_s19  ;;  %s3145_s29 = smov [#allocation10]  }
  0x72   : > { %319 = vmatprep.subr.mxu0 %v292_v11  ;;  %2574 = vmatprep.subr.mxu1 %v302_v20  ;;  %v271_v33 = vld [vmem:[#allocation5 + $0x50] sm:$0xff]  ;;  %v270_v34 = vld [vmem:[#allocation5 + $0x48] sm:$0xff]  ;;  %v268_v36 = vld [vmem:[#allocation5 + $0x38] sm:$0xff] }
  0x73   : > { %320 = vmatpush1.msra.mxu0 %v291_v12  ;;  %2575 = vmatpush3.msra.mxu1 %v302_v20  ;;  %v287_v35 = vld [vmem:[#allocation5 + $0xd0] sm:$0xff]  ;;  %v284_v38 = vld [vmem:[#allocation5 + $0xb8] sm:$0xff]  ;;  %v265_v39 = vld [vmem:[#allocation5 + $0x20] sm:$0xff]  ;;  %p3057_p5 = pnand %p3056_p12, %p3760_p0 }
  0x74   : > { %321 = vmatprep.subr.mxu0 %v289_v13  ;;  %2576 = vmatprep.subr.mxu1 %v299_v23  ;;  %v267_v37 = vld [vmem:[#allocation5 + $0x30] sm:$0xff]  ;;  %v264_v40 = vld [vmem:[#allocation5 + $0x18] sm:$0xff]  ;;  %v281_v41 = vld [vmem:[#allocation5 + $0xa0] sm:$0xff] }
  0x75   : > { %322 = vmatpush1.msra.mxu0 %v288_v15  ;;  %2577 = vmatpush3.msra.mxu1 %v299_v23  ;;  %v262_v42 = vld [vmem:[#allocation5 + $0x8] sm:$0xff]  ;;  %v261_v43 = vld [vmem:[#allocation5] sm:$0xff]  ;;  %v275_v45 = vld [vmem:[#allocation5 + $0x70] sm:$0xff]  ;;  %p3058_p10 = pneg %p3057_p5 }
  0x76   : > { %323 = vmatprep.subr.mxu0 %v286_v18  ;;  %2578 = vmatprep.subr.mxu1 %v296_v26  ;;  %v278_v44 = vld [vmem:[#allocation5 + $0x88] sm:$0xff]  ;;  %v272_v46 = vld [vmem:[#allocation5 + $0x58] sm:$0xff]  ;;  %v269_v48 = vld [vmem:[#allocation5 + $0x40] sm:$0xff] }
  0x77   : > { %324 = vmatpush1.msra.mxu0 %v285_v19  ;;  %2579 = vmatpush3.msra.mxu1 %v296_v26  ;;  %v259_v47 = vld [vmem:[%s3320_s24 + $0x8] sm:$0xff]  ;;  %v263_v50 = vld [vmem:[#allocation5 + $0x10] sm:$0xff]  ;;  %v260_v54 = vld [vmem:[#allocation8] sm:$0x3f] }
  0x78   : > { %325 = vmatprep.subr.mxu0 %v283_v21  ;;  %2580 = vmatprep.subr.mxu1 %v293_v29  ;;  %v266_v49 = vld [vmem:[#allocation5 + $0x28] sm:$0xff]  ;;  %v464_v55 = vrot.slane %v260_v54, %v463_v53  ;;  %v470_v59 = vrot.slane %v260_v54, %v469_v56  ;;  %v476_v3 = vrot.slane %v260_v54, %v475_v2 }
  0x79   : > { %326 = vmatpush1.msra.mxu0 %v282_v22  ;;  %2581 = vmatpush3.msra.mxu1 %v293_v29 }
  0x7a   : > { %327 = vmatprep.subr.mxu0 %v280_v24  ;;  %2582 = vmatprep.subr.mxu1 %v290_v32 }
  0x7b   : > { %328 = vmatpush1.msra.mxu0 %v279_v25  ;;  %2583 = vmatpush3.msra.mxu1 %v290_v32 }
  0x7c   : > { %329 = vmatprep.subr.mxu0 %v277_v27  ;;  %2584 = vmatprep.subr.mxu1 %v287_v35 }
  0x7d   : > { %330 = vmatpush1.msra.mxu0 %v276_v28  ;;  %2585 = vmatpush3.msra.mxu1 %v287_v35 }
  0x7e   : > { %331 = vmatprep.subr.mxu0 %v274_v30  ;;  %2586 = vmatprep.subr.mxu1 %v284_v38 }
  0x7f   : > { %332 = vmatpush1.msra.mxu0 %v273_v31  ;;  %2587 = vmatpush3.msra.mxu1 %v284_v38 }
  0x80   : > { %333 = vmatprep.subr.mxu0 %v271_v33  ;;  %2588 = vmatprep.subr.mxu1 %v281_v41 }
  0x81   : > { %334 = vmatpush1.msra.mxu0 %v270_v34  ;;  %2589 = vmatpush3.msra.mxu1 %v281_v41 }
  0x82   : > { %335 = vmatprep.subr.mxu0 %v268_v36  ;;  %2590 = vmatprep.subr.mxu1 %v278_v44 }
  0x83   : > { %336 = vmatpush1.msra.mxu0 %v267_v37  ;;  %2591 = vmatpush3.msra.mxu1 %v278_v44 }
  0x84   : > { %337 = vmatprep.subr.mxu0 %v265_v39  ;;  %2592 = vmatprep.subr.mxu1 %v275_v45 }
  0x85   : > { %338 = vmatpush1.msra.mxu0 %v264_v40  ;;  %2593 = vmatpush3.msra.mxu1 %v275_v45 }
  0x86   : > { %339 = vmatprep.subr.mxu0 %v262_v42  ;;  %2594 = vmatprep.subr.mxu1 %v272_v46 }
  0x87   : > { %340 = vmatpush1.msra.mxu0 %v261_v43  ;;  %2595 = vmatpush3.msra.mxu1 %v272_v46 }
  0x88   : > { %374 = vmatmul.mubr.f32.vlgmr.msra.gmra.mxu0 %v3336_v14  ;;  %2596 = vmatprep.subr.mxu1 %v269_v48 }
  0x89   : > { %379 = vmatprep.mubr.f32.mxu0 %v3137_v0  ;;  %2597 = vmatpush3.msra.mxu1 %v269_v48 }
  0x8a   : > { %2598 = vmatprep.subr.mxu1 %v266_v49 }
  0x8b   : > { %2599 = vmatpush3.msra.mxu1 %v266_v49 }
  0x8c   : > { %380 = vmatmul.mubr.f32.gmra.mxu0 %v259_v47  ;;  %2600 = vmatprep.subr.mxu1 %v263_v50 }
  0x8d   : > { %2601 = vmatpush3.msra.mxu1 %v263_v50 }
  0x8e   : > { %2603 = vmatmul.mubr.f32.vlgmr.msra.gmra.mxu1 %v259_v47 }
 0x148   : > { %v375_v57 = vpop.f32.mrf.mxu0 }
 0x149   : > { %v465_v58 = vadd.f32 %v464_v55, %v375_v57 }
 0x14a   : > { %v377_v60 = vpop.f32.mrf.mxu0 }
 0x14b   : > { %485 = vrot.lane.b32.xlu0 %v465_v58, %s3138_s21  ;;  %481 = vrot.lane.b32.xlu1 %v465_v58, %s3139_s23  ;;  %v471_v62 = vadd.f32 %v470_v59, %v377_v60 }
 0x14c   : > { %2609 = vmatprep.mubr.msk.f32.mxu1 %vm583_vm0, %v465_v58  ;;  %v381_v61 = vpop.f32.mrf.mxu0 }
 0x14d   : > { %v466_v0 = vadd.f32 %v464_v55, %v381_v61 }
 0x14e   : > { %v383_v63 = vpop.f32.mrf.mxu0  ;;  %v2604_v4 = vpop.f32.mrf.mxu1 }
 0x14f   : > { %v472_v1 = vadd.f32 %v470_v59, %v383_v63  ;;  %515 = vrot.lane.b32.xlu1 %v471_v62, %s3138_s21  ;;  %511 = vrot.lane.b32.xlu0 %v471_v62, %s3139_s23  ;;  %v3381_v6 = vadd.f32 %v2604_v4, %v476_v3 }
 0x150   : > { %v452_v5 = vpop.f32.mrf.mxu1 }
 0x151   : > { %2605 = vmatprep.subr.msk.mxu1 %vm583_vm0, %v472_v1  ;;  %v3383_v7 = vadd.f32 %v476_v3, %v452_v5 }
 0x152   : > { %2606 = vmatpush3.xpose.msk.msra.mxu1 %vm583_vm0, %v472_v1 }
 0x153   : > { %519 = vrot.lane.b32.xlu1 %v471_v62, %s3140_s9  ;;  %483 = vrot.lane.b32.xlu0 %v466_v0, %s3139_s23 }
 0x154   : > { %2607 = vmatprep.subr.msk.mxu1 %vm583_vm0, %v471_v62 }
 0x156   : > { %2608 = vmatpush3.xpose.msk.msra.mxu1 %vm583_vm0, %v471_v62 }
 0x157   : > { %489 = vrot.lane.b32.xlu1 %v465_v58, %s3140_s9  ;;  %513 = vrot.lane.b32.xlu0 %v472_v1, %s3139_s23 }
 0x159   : > { %2610 = vmatmul.mubr.msk.f32.vlgmr.msra.gmra.mxu1 %vm583_vm0, %v466_v0 }
 0x15b   : > { %491 = vrot.lane.b32.xlu1 %v466_v0, %s3140_s9  ;;  %487 = vrot.lane.b32.xlu0 %v466_v0, %s3138_s21 }
 0x15f   : > { %517 = vrot.lane.b32.xlu1 %v472_v1, %s3138_s21  ;;  %523 = vrot.lane.b32.xlu0 %v471_v62, %s3141_s10 }
 0x163   : > { %527 = vrot.lane.b32.xlu1 %v471_v62, %s3142_s12  ;;  %493 = vrot.lane.b32.xlu0 %v465_v58, %s3141_s10 }
 0x167   : > { %521 = vrot.lane.b32.xlu1 %v472_v1, %s3140_s9  ;;  %495 = vrot.lane.b32.xlu0 %v466_v0, %s3141_s10 }
 0x16b   : > { %497 = vrot.lane.b32.xlu1 %v465_v58, %s3142_s12  ;;  %525 = vrot.lane.b32.xlu0 %v472_v1, %s3141_s10 }
 0x16f   : > { %499 = vrot.lane.b32.xlu1 %v466_v0, %s3142_s12  ;;  %529 = vrot.lane.b32.xlu0 %v472_v1, %s3142_s12 }
 0x173   : > { %533 = vrot.lane.b32.xlu1 %v472_v1, %s3143_s14  ;;  %531 = vrot.lane.b32.xlu0 %v471_v62, %s3143_s14 }
 0x177   : > { %535 = vrot.lane.b32.xlu1 %v471_v62, %s3144_s25  ;;  %537 = vrot.lane.b32.xlu0 %v472_v1, %s3144_s25 }
 0x17b   : > { %503 = vrot.lane.b32.xlu1 %v466_v0, %s3143_s14  ;;  %501 = vrot.lane.b32.xlu0 %v465_v58, %s3143_s14 }
 0x17f   : > { %507 = vrot.lane.b32.xlu1 %v466_v0, %s3144_s25  ;;  %505 = vrot.lane.b32.xlu0 %v465_v58, %s3144_s25 }
 0x183   : > { %543 = vrot.lane.b32.xlu1 %v3381_v6, %s3139_s23  ;;  %541 = vrot.lane.b32.xlu0 %v3383_v7, %s3139_s23 }
 0x187   : > { %549 = vrot.lane.b32.xlu1 %v3381_v6, %s3138_s21  ;;  %547 = vrot.lane.b32.xlu0 %v3383_v7, %s3138_s21 }
 0x18b   : > { %555 = vrot.lane.b32.xlu1 %v3381_v6, %s3140_s9  ;;  %561 = vrot.lane.b32.xlu0 %v3381_v6, %s3141_s10 }
 0x18f   : > { %553 = vrot.lane.b32.xlu1 %v3383_v7, %s3140_s9 }
 0x193   : > { %567 = vrot.lane.b32.xlu1 %v3381_v6, %s3142_s12 }
 0x1bd   : > { %v486_v8 = vpop.permute.xlu0 %485  ;;  %v482_v9 = vpop.permute.xlu1 %481 }
 0x1be   : > { %2616 = vmatprep.mubr.msk.f32.mxu1 %vm583_vm0, %v482_v9 }
 0x1c1   : > { %v516_v10 = vpop.permute.xlu1 %515  ;;  %v512_v11 = vpop.permute.xlu0 %511 }
 0x1c5   : > { %v520_v12 = vpop.permute.xlu1 %519  ;;  %v484_v13 = vpop.permute.xlu0 %483 }
 0x1c9   : > { %v490_v14 = vpop.permute.xlu1 %489  ;;  %v514_v15 = vpop.permute.xlu0 %513 }
 0x1ca   : > { %2612 = vmatprep.subr.msk.mxu1 %vm583_vm0, %v514_v15 }
 0x1cb   : > { %2613 = vmatpush3.xpose.msk.msra.mxu1 %vm583_vm0, %v514_v15 }
 0x1cc   : > { %2614 = vmatprep.subr.msk.mxu1 %vm583_vm0, %v512_v11 }
 0x1cd   : > { %v492_v16 = vpop.permute.xlu1 %491  ;;  %v488_v17 = vpop.permute.xlu0 %487 }
 0x1cf   : > { %2615 = vmatpush3.xpose.msk.msra.mxu1 %vm583_vm0, %v512_v11 }
 0x1d1   : > { %v518_v18 = vpop.permute.xlu1 %517  ;;  %v524_v19 = vpop.permute.xlu0 %523 }
 0x1d2   : > { %2617 = vmatmul.mubr.msk.f32.vlgmr.msra.gmra.mxu1 %vm583_vm0, %v484_v13  ;;  %2619 = vmatprep.subr.msk.mxu1 %vm583_vm0, %v518_v18 }
 0x1d3   : > { %2620 = vmatpush3.xpose.msk.msra.mxu1 %vm583_vm0, %v518_v18  ;;  %2623 = vmatprep.mubr.msk.f32.mxu1 %vm583_vm0, %v486_v8 }
 0x1d4   : > { %2621 = vmatprep.subr.msk.mxu1 %vm583_vm0, %v516_v10 }
 0x1d5   : > { %v528_v20 = vpop.permute.xlu1 %527  ;;  %v494_v21 = vpop.permute.xlu0 %493 }
 0x1d6   : > { %2637 = vmatprep.mubr.msk.f32.mxu0 %vm583_vm0, %v494_v21 }
 0x1d7   : > { %2622 = vmatpush3.xpose.msk.msra.mxu1 %vm583_vm0, %v516_v10 }
 0x1d9   : > { %v522_v22 = vpop.permute.xlu1 %521  ;;  %v496_v23 = vpop.permute.xlu0 %495 }
 0x1da   : > { %2624 = vmatmul.mubr.msk.f32.vlgmr.msra.gmra.mxu1 %vm583_vm0, %v488_v17  ;;  %2626 = vmatprep.subr.msk.mxu1 %vm583_vm0, %v522_v22 }
 0x1db   : > { %2627 = vmatpush3.xpose.msk.msra.mxu1 %vm583_vm0, %v522_v22  ;;  %2630 = vmatprep.mubr.msk.f32.mxu1 %vm583_vm0, %v490_v14 }
 0x1dc   : > { %2628 = vmatprep.subr.msk.mxu1 %vm583_vm0, %v520_v12 }
 0x1dd   : > { %v498_v24 = vpop.permute.xlu1 %497  ;;  %v526_v25 = vpop.permute.xlu0 %525 }
 0x1de   : > { %2633 = vmatprep.subr.msk.mxu0 %vm583_vm0, %v526_v25 }
 0x1df   : > { %2629 = vmatpush3.xpose.msk.msra.mxu1 %vm583_vm0, %v520_v12  ;;  %2634 = vmatpush3.xpose.msk.msra.mxu0 %vm583_vm0, %v526_v25 }
 0x1e0   : > { %2635 = vmatprep.subr.msk.mxu0 %vm583_vm0, %v524_v19 }
 0x1e1   : > { %v500_v26 = vpop.permute.xlu1 %499  ;;  %v530_v27 = vpop.permute.xlu0 %529 }
 0x1e2   : > { %2631 = vmatmul.mubr.msk.f32.vlgmr.msra.gmra.mxu1 %vm583_vm0, %v492_v16  ;;  %2640 = vmatprep.subr.msk.mxu1 %vm583_vm0, %v530_v27 }
 0x1e3   : > { %2636 = vmatpush3.xpose.msk.msra.mxu0 %vm583_vm0, %v524_v19  ;;  %2641 = vmatpush3.xpose.msk.msra.mxu1 %vm583_vm0, %v530_v27 }
 0x1e4   : > { %2644 = vmatprep.mubr.msk.f32.mxu1 %vm583_vm0, %v498_v24  ;;  %2642 = vmatprep.subr.msk.mxu1 %vm583_vm0, %v528_v20 }
 0x1e5   : > { %v534_v28 = vpop.permute.xlu1 %533  ;;  %v532_v29 = vpop.permute.xlu0 %531 }
 0x1e6   : > { %2638 = vmatmul.mubr.msk.f32.vlgmr.msra.gmra.mxu0 %vm583_vm0, %v496_v23  ;;  %2647 = vmatprep.subr.msk.mxu0 %vm583_vm0, %v534_v28 }
 0x1e7   : > { %2643 = vmatpush3.xpose.msk.msra.mxu1 %vm583_vm0, %v528_v20  ;;  %2648 = vmatpush3.xpose.msk.msra.mxu0 %vm583_vm0, %v534_v28 }
 0x1e8   : > { %2649 = vmatprep.subr.msk.mxu0 %vm583_vm0, %v532_v29 }
 0x1e9   : > { %v536_v30 = vpop.permute.xlu1 %535  ;;  %v538_v31 = vpop.permute.xlu0 %537 }
 0x1ea   : > { %2645 = vmatmul.mubr.msk.f32.vlgmr.msra.gmra.mxu1 %vm583_vm0, %v500_v26  ;;  %2654 = vmatprep.subr.msk.mxu1 %vm583_vm0, %v538_v31 }
 0x1eb   : > { %2650 = vmatpush3.xpose.msk.msra.mxu0 %vm583_vm0, %v532_v29  ;;  %2655 = vmatpush3.xpose.msk.msra.mxu1 %vm583_vm0, %v538_v31 }
 0x1ec   : > { %2656 = vmatprep.subr.msk.mxu1 %vm583_vm0, %v536_v30  ;;  %2661 = vmatprep.subr.mxu0 %v3381_v6 }
 0x1ed   : > { %v504_v32 = vpop.permute.xlu1 %503  ;;  %v502_v33 = vpop.permute.xlu0 %501 }
 0x1ee   : > { %2651 = vmatprep.mubr.msk.f32.mxu0 %vm583_vm0, %v502_v33 }
 0x1ef   : > { %2652 = vmatmul.mubr.msk.f32.vlgmr.msra.gmra.mxu0 %vm583_vm0, %v504_v32  ;;  %2657 = vmatpush3.xpose.msk.msra.mxu1 %vm583_vm0, %v536_v30 }
 0x1f0   : > { %2662 = vmatpush3.msra.mxu0 %v3381_v6 }
 0x1f1   : > { %v508_v34 = vpop.permute.xlu1 %507  ;;  %v506_v35 = vpop.permute.xlu0 %505  ;;  %2663 = vmatprep.subr.mxu0 %v3383_v7 }
 0x1f2   : > { %2658 = vmatprep.mubr.msk.f32.mxu1 %vm583_vm0, %v506_v35  ;;  %2664 = vmatpush3.msra.mxu0 %v3383_v7 }
 0x1f3   : > { %2659 = vmatmul.mubr.msk.f32.vlgmr.msra.gmra.mxu1 %vm583_vm0, %v508_v34 }
 0x1f5   : > { %v544_v36 = vpop.permute.xlu1 %543  ;;  %v542_v38 = vpop.permute.xlu0 %541 }
 0x1f6   : > { %2668 = vmatprep.subr.mxu1 %v544_v36 }
 0x1f7   : > { %2669 = vmatpush3.msra.mxu1 %v544_v36 }
 0x1f8   : > { %2670 = vmatprep.subr.mxu1 %v542_v38 }
 0x1f9   : > { %v3447_v37 = vpop.permute.xlu1 %549  ;;  %2671 = vmatpush3.msra.mxu1 %v542_v38  ;;  %v3525_v18 = vpop.permute.xlu0 %547 }
 0x1fa   : > { %2675 = vmatprep.subr.mxu0 %v3447_v37 }
 0x1fd   : > { %v3450_v39 = vpop.permute.xlu1 %555  ;;  %v3529_v19 = vpop.permute.xlu0 %561 }
 0x1fe   : > { %2682 = vmatprep.subr.mxu1 %v3450_v39 }
 0x201   : > { %v3509_v9 = vpop.permute.xlu1 %553 }
 0x205   : > { %v3513_v10 = vpop.permute.xlu1 %567 }
 0x219   : > { %v2611_v40 = vpop.f32.mrf.mxu1 }
 0x21a   : > { %v1251_v41 = vsel %vm583_vm0, %v2611_v40, -inf }
 0x21b   : > { %1252 = vmax.xlane.f32.xlu1 %v1251_v41  ;;  %v658_v42 = vpop.f32.mrf.mxu1 }
 0x21c   : > { %v1248_v43 = vsel %vm583_vm0, %v658_v42, -inf }
 0x21d   : > { %1249 = vmax.xlane.f32.xlu0 %v1248_v43 }
 0x292   : > { %v3455_v44 = vpop.f32.mrf.mxu1 }
 0x293   : > { %v1257_v45 = vsel %vm583_vm0, %v3455_v44, -inf }
 0x294   : > { %1258 = vmax.xlane.f32.xlu0 %v1257_v45  ;;  %v3459_v46 = vpop.f32.mrf.mxu1 }
 0x295   : > { %v1254_v54 = vsel %vm583_vm0, %v3459_v46, -inf }
 0x29a   : > { %v3461_v47 = vpop.f32.mrf.mxu1 }
 0x29b   : > { %v1263_v58 = vsel %vm583_vm0, %v3461_v47, -inf }
 0x29c   : > { %v3471_v53 = vpop.f32.mrf.mxu1 }
 0x29d   : > { %v1260_v56 = vsel %vm583_vm0, %v3471_v53, -inf }
 0x2a2   : > { %v3475_v55 = vpop.f32.mrf.mxu1 }
 0x2a3   : > { %v1269_v2 = vsel %vm583_vm0, %v3475_v55, -inf }
 0x2a4   : > { %v3483_v59 = vpop.f32.mrf.mxu1  ;;  %v1253_v11 = vpop.xlane.xlu1 %1252 }
 0x2a5   : > { %v1266_v0 = vsel %vm583_vm0, %v3483_v59, -inf  ;;  %v1297_v12 = vsub.f32 %v2611_v40, %v1253_v11 }
 0x2a6   : > { %v3463_v48 = vpop.f32.mrf.mxu0  ;;  %v1250_v20 = vpop.xlane.xlu0 %1249 }
 0x2a7   : > { %v1275_v49 = vsel %vm583_vm0, %v3463_v48, -inf  ;;  %v1314_v13 = vmul.f32 1.442695, %v1297_v12  ;;  %v1296_v21 = vsub.f32 %v658_v42, %v1250_v20 }
 0x2a8   : > { %v3467_v50 = vpop.f32.mrf.mxu0  ;;  %1276 = vmax.xlane.f32.xlu0 %v1275_v49 }
 0x2a9   : > { %v1272_v51 = vsel %vm583_vm0, %v3467_v50, -inf  ;;  %2878 = vpow2.f32 %v1314_v13  ;;  %v1312_v22 = vmul.f32 1.442695, %v1296_v21 }
 0x2aa   : > { %1273 = vmax.xlane.f32.xlu1 %v1272_v51  ;;  %v3489_v62 = vpop.f32.mrf.mxu1 }
 0x2ab   : > { %v1281_v4 = vsel %vm583_vm0, %v3489_v62, -inf  ;;  %2880 = vpow2.f32 %v1312_v22 }
 0x2ac   : > { %1255 = vmax.xlane.f32.xlu0 %v1254_v54  ;;  %v3495_v1 = vpop.f32.mrf.mxu1 }
 0x2ad   : > { %v1278_v3 = vsel %vm583_vm0, %v3495_v1, -inf }
 0x2ae   : > { %1261 = vmax.xlane.f32.xlu1 %v1260_v56 }
 0x2af   : > { %v3479_v57 = vpop.f32.mrf.mxu0 }
 0x2b0   : > { %1264 = vmax.xlane.f32.xlu0 %v1263_v58  ;;  %v1287_v63 = vsel %vm583_vm0, %v3479_v57, -inf }
 0x2b1   : > { %v3485_v60 = vpop.f32.mrf.mxu0 }
 0x2b2   : > { %v1284_v61 = vsel %vm583_vm0, %v3485_v60, -inf }
 0x2b3   : > { %1285 = vmax.xlane.f32.xlu1 %v1284_v61  ;;  %v3503_v5 = vpop.f32.mrf.mxu1 }
 0x2b4   : > { %1288 = vmax.xlane.f32.xlu0 %v1287_v63  ;;  %v1293_v8 = vsel %vm583_vm0, %v3503_v5, -inf }
 0x2b5   : > { %v3517_v14 = vpop.f32.mrf.mxu1 }
 0x2b6   : > { %v1290_v15 = vsel %vm583_vm0, %v3517_v14, -inf  ;;  %v3521_v16 = vpop.eup %2878 }
 0x2b7   : > { %1267 = vmax.xlane.f32.xlu1 %v1266_v0  ;;  %v1347_v17 = vsel %vm583_vm0, %v3521_v16, 0.0 }
 0x2b8   : > { %1270 = vmax.xlane.f32.xlu0 %v1269_v2  ;;  %v3532_v26 = vpop.eup %2880 }
 0x2b9   : > { %v1344_v27 = vsel %vm583_vm0, %v3532_v26, 0.0 }
 0x2bb   : > { %1279 = vmax.xlane.f32.xlu1 %v1278_v3 }
 0x2bc   : > { %1282 = vmax.xlane.f32.xlu0 %v1281_v4 }
 0x2c0   : > { %1294 = vmax.xlane.f32.xlu0 %v1293_v8 }
 0x2cc   : > { %565 = vrot.lane.b32.xlu1 %v3383_v7, %s3142_s12 }
 0x2d6   : > { %559 = vrot.lane.b32.xlu0 %v3383_v7, %s3141_s10 }
 0x2da   : > { %573 = vrot.lane.b32.xlu0 %v3381_v6, %s3143_s14 }
 0x2f0   : > { %1291 = vmax.xlane.f32.xlu1 %v1290_v15 }
 0x2f9   : > { %1348 = vadd.xlane.f32.xlu0 %v1347_v17 }
 0x301   : > { %579 = vrot.lane.b32.xlu1 %v3381_v6, %s3144_s25 }
 0x31d   : > { %v1259_v23 = vpop.xlane.xlu0 %1258 }
 0x31e   : > { %v1299_v24 = vsub.f32 %v3455_v44, %v1259_v23 }
 0x320   : > { %v1318_v25 = vmul.f32 1.442695, %v1299_v24 }
 0x322   : > { %2882 = vpow2.f32 %v1318_v25 }
 0x325   : > { %1345 = vadd.xlane.f32.xlu1 %v1344_v27 }
 0x32f   : > { %v3536_v28 = vpop.eup %2882 }
 0x330   : > { %v1353_v6 = vsel %vm583_vm0, %v3536_v28, 0.0 }
 0x331   : > { %v1277_v29 = vpop.xlane.xlu0 %1276  ;;  %1354 = vadd.xlane.f32.xlu0 %v1353_v6 }
 0x332   : > { %v1305_v30 = vsub.f32 %v3463_v48, %v1277_v29 }
 0x333   : > { %v1274_v31 = vpop.xlane.xlu1 %1273 }
 0x334   : > { %v1330_v32 = vmul.f32 1.442695, %v1305_v30  ;;  %v1304_v33 = vsub.f32 %v3467_v50, %v1274_v31 }
 0x335   : > { %v1256_v34 = vpop.xlane.xlu0 %1255 }
 0x336   : > { %2884 = vpow2.f32 %v1330_v32  ;;  %v1298_v35 = vsub.f32 %v3459_v46, %v1256_v34  ;;  %v1328_v38 = vmul.f32 1.442695, %v1304_v33 }
 0x337   : > { %v1262_v36 = vpop.xlane.xlu1 %1261 }
 0x338   : > { %v1316_v40 = vmul.f32 1.442695, %v1298_v35  ;;  %v1300_v41 = vsub.f32 %v3471_v53, %v1262_v36 }
 0x339   : > { %v1265_v42 = vpop.xlane.xlu0 %1264 }
 0x33a   : > { %2886 = vpow2.f32 %v1316_v40  ;;  %v1301_v43 = vsub.f32 %v3461_v47, %v1265_v42  ;;  %v1320_v44 = vmul.f32 1.442695, %v1300_v41 }
 0x33b   : > { %2888 = vpow2.f32 %v1328_v38 }
 0x33c   : > { %v1322_v45 = vmul.f32 1.442695, %v1301_v43  ;;  %v1286_v48 = vpop.xlane.xlu1 %1285 }
 0x33d   : > { %v1308_v49 = vsub.f32 %v3485_v60, %v1286_v48  ;;  %v1289_v50 = vpop.xlane.xlu0 %1288 }
 0x33e   : > { %2890 = vpow2.f32 %v1322_v45  ;;  %v1309_v51 = vsub.f32 %v3479_v57, %v1289_v50 }
 0x33f   : > { %2892 = vpow2.f32 %v1320_v44  ;;  %v1336_v46 = vmul.f32 1.442695, %v1308_v49 }
 0x340   : > { %v1338_v54 = vmul.f32 1.442695, %v1309_v51  ;;  %v1268_v56 = vpop.xlane.xlu1 %1267 }
 0x341   : > { %v1302_v53 = vsub.f32 %v3483_v59, %v1268_v56  ;;  %v1271_v58 = vpop.xlane.xlu0 %1270 }
 0x342   : > { %2894 = vpow2.f32 %v1338_v54  ;;  %v1303_v47 = vsub.f32 %v3475_v55, %v1271_v58 }
 0x343   : > { %v3549_v61 = vpop.eup %2884  ;;  %2896 = vpow2.f32 %v1336_v46  ;;  %v1324_v63 = vmul.f32 1.442695, %v1302_v53 }
 0x344   : > { %v1326_v0 = vmul.f32 1.442695, %v1303_v47  ;;  %v1280_v60 = vpop.xlane.xlu1 %1279  ;;  %v1371_v2 = vsel %vm583_vm0, %v3549_v61, 0.0 }
 0x345   : > { %v1306_v57 = vsub.f32 %v3495_v1, %v1280_v60  ;;  %v1283_v3 = vpop.xlane.xlu0 %1282  ;;  %1372 = vadd.xlane.f32.xlu0 %v1371_v2 }
 0x346   : > { %2898 = vpow2.f32 %v1326_v0  ;;  %v1307_v59 = vsub.f32 %v3489_v62, %v1283_v3 }
 0x347   : > { %v3555_v4 = vpop.eup %2886  ;;  %2900 = vpow2.f32 %v1324_v63  ;;  %v1332_v55 = vmul.f32 1.442695, %v1306_v57 }
 0x348   : > { %v1334_v8 = vmul.f32 1.442695, %v1307_v59  ;;  %v1350_v11 = vsel %vm583_vm0, %v3555_v4, 0.0  ;;  %v3559_v12 = vpop.eup %2888  ;;  %v3602_v38 = vpop.permute.xlu1 %565 }
 0x349   : > { %v1295_v13 = vpop.xlane.xlu0 %1294  ;;  %1351 = vadd.xlane.f32.xlu1 %v1350_v11  ;;  %v1368_v20 = vsel %vm583_vm0, %v3559_v12, 0.0 }
 0x34a   : > { %2902 = vpow2.f32 %v1334_v8  ;;  %v1311_v1 = vsub.f32 %v3503_v5, %v1295_v13 }
 0x34b   : > { %v3562_v15 = vpop.eup %2890  ;;  %2904 = vpow2.f32 %v1332_v55 }
 0x34c   : > { %v1342_v17 = vmul.f32 1.442695, %v1311_v1  ;;  %v1359_v62 = vsel %vm583_vm0, %v3562_v15, 0.0  ;;  %v3568_v21 = vpop.eup %2892 }
 0x34d   : > { %1360 = vadd.xlane.f32.xlu0 %v1359_v62  ;;  %1369 = vadd.xlane.f32.xlu1 %v1368_v20  ;;  %v1356_v23 = vsel %vm583_vm0, %v3568_v21, 0.0  ;;  %v3611_v45 = vpop.permute.xlu0 %559 }
 0x34e   : > { %2906 = vpow2.f32 %v1342_v17 }
 0x34f   : > { %v3570_v22 = vpop.eup %2894 }
 0x350   : > { %v1383_v5 = vsel %vm583_vm0, %v3570_v22, 0.0  ;;  %v3576_v24 = vpop.eup %2896 }
 0x351   : > { %1384 = vadd.xlane.f32.xlu0 %v1383_v5  ;;  %1357 = vadd.xlane.f32.xlu1 %v1356_v23  ;;  %v1380_v6 = vsel %vm583_vm0, %v3576_v24, 0.0  ;;  %v3613_v48 = vpop.permute.xlu0 %573 }
 0x353   : > { %v3578_v25 = vpop.eup %2898 }
 0x354   : > { %v1365_v27 = vsel %vm583_vm0, %v3578_v25, 0.0  ;;  %v3584_v29 = vpop.eup %2900 }
 0x355   : > { %1366 = vadd.xlane.f32.xlu0 %v1365_v27  ;;  %1381 = vadd.xlane.f32.xlu1 %v1380_v6  ;;  %v1362_v32 = vsel %vm583_vm0, %v3584_v29, 0.0 }
 0x357   : > { %v3586_v30 = vpop.eup %2902 }
 0x358   : > { %v1377_v31 = vsel %vm583_vm0, %v3586_v30, 0.0  ;;  %v3592_v33 = vpop.eup %2904 }
 0x359   : > { %1378 = vadd.xlane.f32.xlu0 %v1377_v31  ;;  %1363 = vadd.xlane.f32.xlu1 %v1362_v32  ;;  %v1374_v36 = vsel %vm583_vm0, %v3592_v33, 0.0 }
 0x35b   : > { %v3594_v34 = vpop.eup %2906 }
 0x35c   : > { %v1389_v35 = vsel %vm583_vm0, %v3594_v34, 0.0 }
 0x35d   : > { %1390 = vadd.xlane.f32.xlu0 %v1389_v35  ;;  %1375 = vadd.xlane.f32.xlu1 %v1374_v36 }
 0x373   : > { %571 = vrot.lane.b32.xlu0 %v3383_v7, %s3143_s14 }
 0x379   : > { %v1292_v40 = vpop.xlane.xlu1 %1291 }
 0x37a   : > { %v1310_v41 = vsub.f32 %v3517_v14, %v1292_v40 }
 0x37c   : > { %v1340_v42 = vmul.f32 1.442695, %v1310_v41 }
 0x37d   : > { %v3615_v49 = vpop.permute.xlu1 %579 }
 0x37e   : > { %2908 = vpow2.f32 %v1340_v42 }
 0x382   : > { %v1349_v50 = vpop.xlane.xlu0 %1348 }
 0x383   : > { %2910 = vrcp.f32 %v1349_v50 }
 0x38b   : > { %v3605_v43 = vpop.eup %2908 }
 0x38c   : > { %v1386_v44 = vsel %vm583_vm0, %v3605_v43, 0.0 }
 0x38d   : > { %1387 = vadd.xlane.f32.xlu1 %v1386_v44 }
 0x390   : > { %v2911_v51 = vpop.eup %2910 }
 0x391   : > { %v1409_v56 = vmul.f32 %v2911_v51, %v3521_v16  ;;  %v2161_v51 = vld [vmem:[#allocation7 + $0x68] sm:$0xff] }
 0x39e   : > { %577 = vrot.lane.b32.xlu1 %v3383_v7, %s3144_s25 }
 0x3ae   : > { %v1346_v14 = vpop.xlane.xlu1 %1345 }
 0x3af   : > { %2912 = vrcp.f32 %v1346_v14 }
 0x3ba   : > { %v1355_v7 = vpop.xlane.xlu0 %1354 }
 0x3bb   : > { %2914 = vrcp.f32 %v1355_v7 }
 0x3bc   : > { %v2913_v46 = vpop.eup %2912 }
 0x3bd   : > { %v1408_v54 = vmul.f32 %v2913_v46, %v3532_v26 }
 0x3bf   : > { %2665 = vmatprep.mubr.msk.f32.mxu0 %vm583_vm0, %v1408_v54 }
 0x3c0   : > { %2666 = vmatmul.mubr.msk.f32.vlgmr.msra.gmra.mxu0 %vm583_vm0, %v1409_v56 }
 0x3c1   : > { %2676 = vmatpush3.msra.mxu0 %v3447_v37 }
 0x3c2   : > { %2677 = vmatprep.subr.mxu0 %v3525_v18 }
 0x3c3   : > { %2678 = vmatpush3.msra.mxu0 %v3525_v18 }
 0x3c4   : > { %2689 = vmatprep.subr.mxu0 %v3529_v19 }
 0x3c8   : > { %v2915_v60 = vpop.eup %2914 }
 0x3c9   : > { %v1411_v3 = vmul.f32 %v2915_v60, %v3536_v28  ;;  %v2155_v60 = vld [vmem:[#allocation7 + $0x38] sm:$0xff] }
 0x3ce   : > { %v1373_v53 = vpop.xlane.xlu0 %1372 }
 0x3d2   : > { %v1352_v58 = vpop.xlane.xlu1 %1351 }
 0x3d3   : > { %2916 = vrcp.f32 %v1352_v58 }
 0x3d6   : > { %v1361_v26 = vpop.xlane.xlu0 %1360  ;;  %v1370_v47 = vpop.xlane.xlu1 %1369 }
 0x3d7   : > { %2918 = vrcp.f32 %v1361_v26  ;;  %v2159_v26 = vld [vmem:[#allocation7 + $0x58] sm:$0xff] }
 0x3d8   : > { %2920 = vrcp.f32 %v1370_v47 }
 0x3da   : > { %v1385_v16 = vpop.xlane.xlu0 %1384  ;;  %v1358_v63 = vpop.xlane.xlu1 %1357 }
 0x3db   : > { %2922 = vrcp.f32 %v1358_v63  ;;  %v2158_v63 = vld [vmem:[#allocation7 + $0x50] sm:$0xff] }
 0x3dc   : > { %2924 = vrcp.f32 %v1373_v53  ;;  %v2160_v53 = vld [vmem:[#allocation7 + $0x60] sm:$0xff] }
 0x3de   : > { %v1367_v0 = vpop.xlane.xlu0 %1366  ;;  %v1382_v37 = vpop.xlane.xlu1 %1381 }
 0x3df   : > { %2926 = vrcp.f32 %v1382_v37  ;;  %v2156_v37 = vld [vmem:[#allocation7 + $0x40] sm:$0xff] }
 0x3e0   : > { %v2917_v2 = vpop.eup %2916  ;;  %2928 = vrcp.f32 %v1385_v16 }
 0x3e1   : > { %v1410_v18 = vmul.f32 %v2917_v2, %v3555_v4  ;;  %2930 = vrcp.f32 %v1367_v0  ;;  %v2157_v0 = vld [vmem:[#allocation7 + $0x48] sm:$0xff]  ;;  %v2154_v2 = vld [vmem:[#allocation7 + $0x30] sm:$0xff] }
 0x3e2   : > { %v1364_v57 = vpop.xlane.xlu1 %1363  ;;  %v1379_v59 = vpop.xlane.xlu0 %1378 }
 0x3e3   : > { %2672 = vmatprep.mubr.msk.f32.mxu1 %vm583_vm0, %v1410_v18  ;;  %2932 = vrcp.f32 %v1364_v57  ;;  %v2153_v18 = vld [vmem:[#allocation7 + $0x28] sm:$0xff]  ;;  %v2152_v57 = vld [vmem:[#allocation7 + $0x20] sm:$0xff] }
 0x3e4   : > { %2673 = vmatmul.mubr.msk.f32.vlgmr.msra.gmra.mxu1 %vm583_vm0, %v1411_v3  ;;  %v2919_v8 = vpop.eup %2918  ;;  %2934 = vrcp.f32 %v1379_v59  ;;  %v2151_v3 = vld [vmem:[#allocation7 + $0x18] sm:$0xff]  ;;  %v2150_v59 = vld [vmem:[#allocation7 + $0x10] sm:$0xff] }
 0x3e5   : > { %2683 = vmatpush3.msra.mxu1 %v3450_v39  ;;  %v2921_v4 = vpop.eup %2920  ;;  %v1413_v13 = vmul.f32 %v2919_v8, %v3562_v15  ;;  %v2148_v8 = vld [vmem:[#allocation7] sm:$0xff] }
 0x3e6   : > { %2684 = vmatprep.subr.mxu1 %v3509_v9  ;;  %v1376_v55 = vpop.xlane.xlu1 %1375  ;;  %v1391_v17 = vpop.xlane.xlu0 %1390  ;;  %v1416_v39 = vmul.f32 %v2921_v4, %v3559_v12 }
 0x3e7   : > { %2685 = vmatpush3.msra.mxu1 %v3509_v9  ;;  %2936 = vrcp.f32 %v1376_v55  ;;  %v2149_v55 = vld [vmem:[#allocation7 + $0x8] sm:$0xff] }
 0x3e8   : > { %2696 = vmatprep.subr.mxu1 %v3513_v10  ;;  %v2923_v28 = vpop.eup %2922  ;;  %2938 = vrcp.f32 %v1391_v17 }
 0x3e9   : > { %v1412_v11 = vmul.f32 %v2923_v28, %v3568_v21  ;;  %v2925_v1 = vpop.eup %2924 }
 0x3ea   : > { %v1417_v20 = vmul.f32 %v2925_v1, %v3549_v61  ;;  %v572_v12 = vpop.permute.xlu0 %571 }
 0x3eb   : > { %2679 = vmatprep.mubr.msk.f32.mxu0 %vm583_vm0, %v1412_v11 }
 0x3ec   : > { %v2927_v62 = vpop.eup %2926  ;;  %2680 = vmatmul.mubr.msk.f32.vlgmr.msra.gmra.mxu0 %vm583_vm0, %v1413_v13 }
 0x3ed   : > { %2690 = vmatpush3.msra.mxu0 %v3529_v19  ;;  %2693 = vmatprep.mubr.msk.f32.mxu0 %vm583_vm0, %v1416_v39  ;;  %v2929_v9 = vpop.eup %2928  ;;  %v1420_v15 = vmul.f32 %v2927_v62, %v3576_v24 }
 0x3ee   : > { %2691 = vmatprep.subr.mxu0 %v3611_v45  ;;  %v2931_v21 = vpop.eup %2930  ;;  %v1421_v23 = vmul.f32 %v2929_v9, %v3570_v22 }
 0x3ef   : > { %2692 = vmatpush3.msra.mxu0 %v3611_v45  ;;  %v1415_v61 = vmul.f32 %v2931_v21, %v3578_v25 }
 0x3f0   : > { %v2933_v5 = vpop.eup %2932  ;;  %2703 = vmatprep.subr.mxu0 %v3613_v48  ;;  %2694 = vmatmul.mubr.msk.f32.vlgmr.msra.gmra.mxu0 %vm583_vm0, %v1417_v20 }
 0x3f1   : > { %2704 = vmatpush3.msra.mxu0 %v3613_v48  ;;  %2707 = vmatprep.mubr.msk.f32.mxu0 %vm583_vm0, %v1420_v15  ;;  %v1414_v19 = vmul.f32 %v2933_v5, %v3584_v29  ;;  %v2935_v27 = vpop.eup %2934  ;;  %v2162_v48 = vld [vmem:[#allocation7 + $0x70] sm:$0xff] }
 0x3f2   : > { %2705 = vmatprep.subr.mxu0 %v572_v12  ;;  %v1419_v29 = vmul.f32 %v2935_v27, %v3586_v30 }
 0x3f3   : > { %2706 = vmatpush3.msra.mxu0 %v572_v12  ;;  %2686 = vmatprep.mubr.msk.f32.mxu1 %vm583_vm0, %v1414_v19 }
 0x3f4   : > { %v2937_v24 = vpop.eup %2936  ;;  %2687 = vmatmul.mubr.msk.f32.vlgmr.msra.gmra.mxu1 %vm583_vm0, %v1415_v61  ;;  %2708 = vmatmul.mubr.msk.f32.vlgmr.msra.gmra.mxu0 %vm583_vm0, %v1421_v23 }
 0x3f5   : > { %2697 = vmatpush3.msra.mxu1 %v3513_v10  ;;  %v1418_v6 = vmul.f32 %v2937_v24, %v3592_v33  ;;  %v2939_v25 = vpop.eup %2938 }
 0x3f6   : > { %2698 = vmatprep.subr.mxu1 %v3602_v38  ;;  %v1423_v32 = vmul.f32 %v2939_v25, %v3594_v34 }
 0x3f7   : > { %2699 = vmatpush3.msra.mxu1 %v3602_v38  ;;  %2700 = vmatprep.mubr.msk.f32.mxu1 %vm583_vm0, %v1418_v6 }
 0x3f8   : > { %2710 = vmatprep.subr.mxu1 %v3615_v49  ;;  %2701 = vmatmul.mubr.msk.f32.vlgmr.msra.gmra.mxu1 %vm583_vm0, %v1419_v29 }
 0x3f9   : > { %2711 = vmatpush3.msra.mxu1 %v3615_v49 }
 0x416   : > { %v1388_v22 = vpop.xlane.xlu1 %1387 }
 0x417   : > { %2940 = vrcp.f32 %v1388_v22 }
 0x41a   : > { %v578_v10 = vpop.permute.xlu1 %577 }
 0x41b   : > { %2712 = vmatprep.subr.mxu1 %v578_v10 }
 0x41c   : > { %2713 = vmatpush3.msra.mxu1 %v578_v10 }
 0x424   : > { %v2941_v31 = vpop.eup %2940 }
 0x425   : > { %v1422_v30 = vmul.f32 %v2941_v31, %v3605_v43  ;;  %v2163_v43 = vld [vmem:[#allocation7 + $0x78] sm:$0xff] }
 0x426   : > { %2717 = vmatprep.subr.mxu0 %v2163_v43 }
 0x427   : > { %2714 = vmatprep.mubr.msk.f32.mxu1 %vm583_vm0, %v1422_v30  ;;  %2718 = vmatpush3.msra.mxu0 %v2163_v43 }
 0x428   : > { %2715 = vmatmul.mubr.msk.f32.vlgmr.msra.gmra.mxu1 %vm583_vm0, %v1423_v32  ;;  %2719 = vmatprep.subr.mxu0 %v2162_v48 }
 0x429   : > { %2720 = vmatpush3.msra.mxu0 %v2162_v48  ;;  %v2243_v48 = vsub.s32 3, %v3342_v52 }
 0x42a   : > { %2721 = vmatprep.subr.mxu0 %v2161_v51 }
 0x42b   : > { %2722 = vmatpush3.msra.mxu0 %v2161_v51  ;;  %v2947_v51 = vld [vmem:[%s3320_s24 + $0x8] sm:$0xff] }
 0x42c   : > { %2723 = vmatprep.subr.mxu0 %v2160_v53 }
 0x42d   : > { %2724 = vmatpush3.msra.mxu0 %v2160_v53 }
 0x42e   : > { %2725 = vmatprep.subr.mxu0 %v2159_v26 }
 0x42f   : > { %2726 = vmatpush3.msra.mxu0 %v2159_v26 }
 0x430   : > { %2727 = vmatprep.subr.mxu0 %v2158_v63 }
 0x431   : > { %2728 = vmatpush3.msra.mxu0 %v2158_v63 }
 0x432   : > { %2729 = vmatprep.subr.mxu0 %v2157_v0 }
 0x433   : > { %2730 = vmatpush3.msra.mxu0 %v2157_v0 }
 0x434   : > { %2731 = vmatprep.subr.mxu0 %v2156_v37 }
 0x435   : > { %2732 = vmatpush3.msra.mxu0 %v2156_v37 }
 0x436   : > { %2733 = vmatprep.subr.mxu0 %v2155_v60 }
 0x437   : > { %2734 = vmatpush3.msra.mxu0 %v2155_v60 }
 0x438   : > { %2735 = vmatprep.subr.mxu0 %v2154_v2 }
 0x439   : > { %2736 = vmatpush3.msra.mxu0 %v2154_v2 }
 0x43a   : > { %2737 = vmatprep.subr.mxu0 %v2153_v18 }
 0x43b   : > { %2738 = vmatpush3.msra.mxu0 %v2153_v18 }
 0x43c   : > { %2739 = vmatprep.subr.mxu0 %v2152_v57 }
 0x43d   : > { %2740 = vmatpush3.msra.mxu0 %v2152_v57 }
 0x43e   : > { %2741 = vmatprep.subr.mxu0 %v2151_v3 }
 0x43f   : > { %2742 = vmatpush3.msra.mxu0 %v2151_v3 }
 0x440   : > { %2743 = vmatprep.subr.mxu0 %v2150_v59 }
 0x441   : > { %2744 = vmatpush3.msra.mxu0 %v2150_v59 }
 0x442   : > { %2745 = vmatprep.subr.mxu0 %v2149_v55 }
 0x443   : > { %2746 = vmatpush3.msra.mxu0 %v2149_v55 }
 0x444   : > { %2747 = vmatprep.subr.mxu0 %v2148_v8 }
 0x445   : > { %2748 = vmatpush3.msra.mxu0 %v2148_v8 }
 0x480   : > { %v3667_v36 = vpop.f32.mrf.mxu0 }
 0x482   : > { %v3670_v40 = vpop.f32.mrf.mxu0 }
 0x4a4   : > { %v2674_v33 = vpop.f32.mrf.mxu1 }
 0x4a6   : > { %v1577_v35 = vpop.f32.mrf.mxu1 }
 0x4a7   : > { %v2843_v38 = vpack.i.bf16 %v2674_v33, %v1577_v35 }
 0x4a9   : > { %2844 = vrot.lane.b32.xlu0 %v2843_v38, %s3144_s25 }
 0x4ac   : > { %v2681_v41 = vpop.f32.mrf.mxu0 }
 0x4ae   : > { %v1658_v42 = vpop.f32.mrf.mxu0 }
 0x4af   : > { %v2848_v44 = vpack.i.bf16 %v2681_v41, %v1658_v42 }
 0x4b0   : > { %v2695_v45 = vpop.f32.mrf.mxu0 }
 0x4b1   : > { %2849 = vrot.lane.b32.xlu1 %v2848_v44, %s3143_s14 }
 0x4b2   : > { %v1820_v34 = vpop.f32.mrf.mxu0 }
 0x4b3   : > { %v2853_v49 = vpack.i.bf16 %v2695_v45, %v1820_v34 }
 0x4b4   : > { %v2688_v50 = vpop.f32.mrf.mxu1  ;;  %v2709_v14 = vpop.f32.mrf.mxu0 }
 0x4b5   : > { %2854 = vrot.lane.b32.xlu1 %v2853_v49, %s3141_s10  ;;  %v2946_v49 = vld [vmem:[#allocation8] sm:$0x3f] }
 0x4b6   : > { %v1739_v46 = vpop.f32.mrf.mxu1  ;;  %v1982_v54 = vpop.f32.mrf.mxu0 }
 0x4b7   : > { %v2858_v56 = vpack.i.bf16 %v2688_v50, %v1739_v46  ;;  %v2863_v7 = vpack.i.bf16 %v2709_v14, %v1982_v54  ;;  %v2244_v50 = vrot.slane %v2946_v49, %v2243_v48 }
 0x4b8   : > { %v2702_v58 = vpop.f32.mrf.mxu1 }
 0x4b9   : > { %2864 = vrot.lane.b32.xlu1 %v2863_v7, %s3138_s21  ;;  %2859 = vrot.lane.b32.xlu0 %v2858_v56, %s3142_s12  ;;  %v2948_v56 = vld [vmem:[%s3320_s24] sm:$0xff]  ;;  %s3059_s24 = sshll.u32 %s3145_s29, 4  ;;  %s3060_s24 = int_to_ptr.vmem [resolvable:$false] %s3059_s24 }
 0x4ba   : > { %v1901_v47 = vpop.f32.mrf.mxu1  ;;  %s3061_s21 = scalar_lea.vmem %s3060_s24, 512  ;;  %p3062_p1 = scmp.lt.s32.totalorder %s3695_s5, %s3060_s24 }
 0x4bb   : > { %v2868_v16 = vpack.i.bf16 %v2702_v58, %v1901_v47  ;;  %p3063_p2 = scmp.lt.s32.totalorder %s3061_s21, %s3055_s19 }
 0x4bd   : > { %2869 = vrot.lane.b32.xlu0 %v2868_v16, %s3140_s9  ;;  %p3064_p3 = por %p3063_p2, %p3062_p1 }
 0x4bf   : > { %p3065_p9 = pnand %p3064_p3, %p3058_p10 }
 0x4e8   : > { %v2716_v4 = vpop.f32.mrf.mxu1 }
 0x4ea   : > { %v2063_v28 = vpop.f32.mrf.mxu1 }
 0x4eb   : > { %v2873_v11 = vpack.i.bf16 %v2716_v4, %v2063_v28  ;;  %v2272_v4 = vsub.s32 4, %v3342_v52  ;;  %v2278_v28 = vsub.s32 5, %v3342_v52 }
 0x4ed   : > { %2874 = vrot.lane.b32.xlu0 %v2873_v11, %s3139_s23  ;;  %v2273_v11 = vrot.slane %v2946_v49, %v2272_v4 }
 0x51b   : > { %v2845_v13 = vpop.permute.xlu0 %2844 }
 0x51c   : > { %v2847_v39 = vunpack.i.h.bf16 %v2845_v13  ;;  %v2846_v62 = vunpack.i.l.bf16 %v2845_v13 }
 0x51e   : > { %v2129_v19 = vsel %vm583_vm0, %v3667_v36, %v2847_v39  ;;  %v2128_v61 = vsel %vm583_vm0, %v3670_v40, %v2846_v62 }
 0x523   : > { %v2850_v1 = vpop.permute.xlu1 %2849 }
 0x524   : > { %v2852_v9 = vunpack.i.h.bf16 %v2850_v1  ;;  %v2851_v20 = vunpack.i.l.bf16 %v2850_v1  ;;  %v2279_v1 = vrot.slane %v2946_v49, %v2278_v28 }
 0x526   : > { %v2132_v23 = vsel %vm2130_vm1, %v2129_v19, %v2852_v9  ;;  %v2131_v27 = vsel %vm2130_vm1, %v2128_v61, %v2851_v20 }
 0x527   : > { %v2855_v21 = vpop.permute.xlu1 %2854 }
 0x528   : > { %v2857_v10 = vunpack.i.h.bf16 %v2855_v21  ;;  %v2856_v25 = vunpack.i.l.bf16 %v2855_v21 }
 0x52b   : > { %v2860_v17 = vpop.permute.xlu0 %2859  ;;  %v2865_v31 = vpop.permute.xlu1 %2864 }
 0x52c   : > { %v2862_v15 = vunpack.i.h.bf16 %v2860_v17  ;;  %v2861_v5 = vunpack.i.l.bf16 %v2860_v17  ;;  %v2867_v36 = vunpack.i.h.bf16 %v2865_v31  ;;  %v2866_v38 = vunpack.i.l.bf16 %v2865_v31 }
 0x52e   : > { %v2134_v24 = vsel %vm2133_vm2, %v2131_v27, %v2861_v5  ;;  %v2135_v6 = vsel %vm2133_vm2, %v2132_v23, %v2862_v15 }
 0x52f   : > { %v2870_v12 = vpop.permute.xlu0 %2869  ;;  %v2138_v30 = vsel %vm2136_vm3, %v2135_v6, %v2857_v10  ;;  %v2137_v32 = vsel %vm2136_vm3, %v2134_v24, %v2856_v25 }
 0x530   : > { %v2872_v29 = vunpack.i.h.bf16 %v2870_v12  ;;  %v2871_v22 = vunpack.i.l.bf16 %v2870_v12 }
 0x532   : > { %v2141_v33 = vsel %vm2139_vm4, %v2138_v30, %v2872_v29  ;;  %v2140_v35 = vsel %vm2139_vm4, %v2137_v32, %v2871_v22 }
 0x533   : > { %v2143_v44 = vsel %vm2142_vm5, %v2140_v35, %v2866_v38  ;;  %v2144_v45 = vsel %vm2142_vm5, %v2141_v33, %v2867_v36 }
 0x55f   : > { %v2875_v40 = vpop.permute.xlu0 %2874 }
 0x560   : > { %v2877_v41 = vunpack.i.h.bf16 %v2875_v40  ;;  %v2876_v42 = vunpack.i.l.bf16 %v2875_v40 }
 0x562   : > { %v2146_v34 = vsel %vm2145_vm6, %v2143_v44, %v2876_v42  ;;  %v2147_v43 = vsel %vm2145_vm6, %v2144_v45, %v2877_v41 }
 0x563   : > { %2749 = vmatprep.mubr.f32.mxu0 %v2146_v34 }
 0x564   : > { %2750 = vmatmul.mubr.f32.vlgmr.msra.gmra.mxu0 %v2147_v43 }
 0x624   : > { %v2751_v14 = vpop.f32.mrf.mxu0 }
 0x625   : > { %v2240_v46 = vadd.f32 %v2947_v51, %v2751_v14 }
 0x626   : > { %v2230_v54 = vpop.f32.mrf.mxu0 }
 0x627   : > { %v2239_v7 = vadd.f32 %v2948_v56, %v2230_v54  ;;  %v2246_v53 = vadd.f32 %v2244_v50, %v2240_v46 }
 0x629   : > { %2249 = vadd.xlane.f32.xlu0 %v2246_v53  ;;  %v2245_v58 = vadd.f32 %v2244_v50, %v2239_v7 }
 0x62b   : > { %2247 = vadd.xlane.f32.xlu1 %v2245_v58 }
 0x6b2   : > { %v2250_v26 = vpop.xlane.xlu0 %2249 }
 0x6b3   : > { %v2253_v47 = vmul.f32 0.0078125, %v2250_v26 }
 0x6b4   : > { %v2248_v16 = vpop.xlane.xlu1 %2247 }
 0x6b5   : > { %v2255_v63 = vsub.f32 %v2246_v53, %v2253_v47  ;;  %v2252_v0 = vmul.f32 0.0078125, %v2248_v16 }
 0x6b7   : > { %v2254_v37 = vsub.f32 %v2245_v58, %v2252_v0  ;;  %v2257_v60 = vmul.f32 %v2255_v63, %v2255_v63 }
 0x6b9   : > { %2260 = vadd.xlane.f32.xlu1 %v2257_v60  ;;  %v2256_v2 = vmul.f32 %v2254_v37, %v2254_v37 }
 0x6bb   : > { %2258 = vadd.xlane.f32.xlu0 %v2256_v2 }
 0x742   : > { %v2261_v18 = vpop.xlane.xlu1 %2260 }
 0x743   : > { %v2263_v57 = vmul.f32 0.0078125, %v2261_v18 }
 0x744   : > { %v2259_v3 = vpop.xlane.xlu0 %2258 }
 0x745   : > { %v2265_v59 = vadd.f32 1e-05, %v2263_v57  ;;  %v2262_v55 = vmul.f32 0.0078125, %v2259_v3 }
 0x747   : > { %2942 = vrsqrt.f32 %v2265_v59  ;;  %v2264_v8 = vadd.f32 1e-05, %v2262_v55 }
 0x749   : > { %2944 = vrsqrt.f32 %v2264_v8 }
 0x754   : > { %v2943_v13 = vpop.eup %2942 }
 0x755   : > { %v2269_v17 = vmul.f32 %v2943_v13, %v2255_v63 }
 0x756   : > { %v2945_v39 = vpop.eup %2944 }
 0x757   : > { %v2275_v62 = vmul.f32 %v2273_v11, %v2269_v17  ;;  %v2268_v9 = vmul.f32 %v2945_v39, %v2254_v37 }
 0x759   : > { %v2281_v20 = vadd.f32 %v2279_v1, %v2275_v62  ;;  %v2274_v21 = vmul.f32 %v2273_v11, %v2268_v9 }
 0x75b   : > { %v2280_v52 = vadd.f32 %v2279_v1, %v2274_v21  ;;  %2283 = vst [vmem:[%s257_s8 + $0x8] sm:$0xff] %v2281_v20 }
 0x75d   : > { %2282 = vst [vmem:[%s257_s8] sm:$0xff] %v2280_v52 }
 0x75e   : > { %3068 = shalt.err (!%p3065_p9)
}
 0x75f   : > { %s3069_s23 = scalar_lea.hbm %s3693_s28, 256  ;;  %s3073_s12 = scalar_lea.hbm %s3742_s4, 512 }
 0x760   : > { %p3070_p7 = scmp.ne.s32.totalorder %s3693_s28, %s3069_s23  ;;  %p3074_p6 = scmp.lt.s32.totalorder %s3693_s28, %s3742_s4 }
 0x761   : > { %p3075_p11 = scmp.lt.s32.totalorder %s3073_s12, %s3069_s23 }
 0x762   : > { %p3071_p4 = pnand %p3070_p7, %p3760_p0 }
 0x763   : > { %p3076_p13 = por %p3075_p11, %p3074_p6 }
 0x764   : > { %p3072_p8 = pneg %p3071_p4 }
 0x766   : > { %p3077_p12 = pnand %p3076_p13, %p3072_p8 }
 0x768   : > { %3080 = shalt.err (!%p3077_p12)
}
 0x769   : > { %s3146_s7 = smov 128   ;;  %s3147_s8 = smov 8  }
 0x76a   : > { %2766 = dma.vmem_to_hbm [thread:$0]  (%p3760_p0), %s3695_s5, 256, %s3693_s28, %s2285_s6, %s3146_s7, %s3146_s7, %s3147_s8  }
 0x76b PF: > { %s2313_s11 = sand.u32 1, %s3115_s15   ;;  %p3761_p5 = scmp.ne.s32.totalorder %s3748_s22, 0 }
 0x76c   : > { %p3762_p10 = scmp.ge.s32.totalorder %s3127_s18, 2  ;;  %s2314_s13 = scalar_lea.sflag [#allocation4], %s2313_s11 }
 0x76e   : > { %p2783_p1 = pnand %p3762_p10, %p3761_p5 }
 0x770   : > { %p2784_p2 = pneg %p2783_p1 }
 0x772   : > { %3110 = dma.done.wait (%p2784_p2), %s2314_s13, 256  }
 0x773   : > { %3112 = vsyncadd (%p2784_p2), %s2314_s13, 4294967040  ;;  %p19_p3 = scmp.ge.s32.totalorder %s3248_s20, 4   ;;  %s3763_s15 = smov %s3119_s16 }
 0x774   : > { %s3764_s16 = smov %s3123_s17  ;;  %s3765_s17 = smov %s3266_s26 }
 0x775   : > { %s3766_s18 = smov %s3248_s20  ;;  %21 = sbr.rel (!%p19_p3) target bundleno = 7 (0x7), region = 93 }
 0x77a   :  { %2319 = vsyncpa [#allocation3], 1 }
 0x77b   :  { %2321 = vsyncpa [#allocation3 + $0x1], 1 }
 0x77c   :  { %2322 = vsyncpa [#allocation6], 1 }
 0x77d   :  { %2323 = vsyncpa [#allocation9], 1 }
 0x77e   :  { %2324 = vsyncpa [#allocation4], 1 }
 0x77f   :  { %2326 = vsyncpa [#allocation4 + $0x1], 1 }

</bundles_post_ra>
